<compile_context>
chip_gen: v7x
topology: tpu7x:2x2x1
jax: 0.10.0
libtpu: 0.0.40
codegen_flags: <defaults>
</compile_context>

<pallas_src>
import functools

import numpy as np

import jax
import jax.numpy as jnp
from jax.experimental import pallas as pl
from jax.experimental.pallas import tpu as pltpu

EPS = 1e-5


# ----------------------------------------------------------------------------
# Fused whole-network kernel (runs once per image; grid over batch)
# ----------------------------------------------------------------------------

def _fused_forward_kernel(*refs, stages, n_valid_last):
    """refs layout:
         [x_img] + per-stage [w, b, (sel)] + [fc1_w, fc1_b, fc2_w]   (inputs)
         [o_ref]                                                     (output)
         per multi-tap stage [stack_scratch]                         (scratch)

    x_img: (Cin_pad, mp_in0) flat per-image activation (lane = flattened H*W).
    Each stage: stack shifted tap slices along sublanes -> one MXU dot;
    optional 2x2 max-pool via two shifted maxima + one crop selection matmul;
    bias + ReLU; zero pad lanes.  Head: lane-mean + fc1/BN/ReLU + fc2.
    """
    n_scratch = sum(1 for s in stages if len(s['taps']) > 1)
    n_in = len(refs) - 1 - n_scratch
    in_refs = refs[:n_in]
    o_ref = refs[n_in]
    scratch = refs[n_in + 1:]

    x = in_refs[0][...]                       # (Cin_pad, mp_in0), f32
    p = 1
    s = 0
    for st in stages:
        w = in_refs[p][...]                   # (Cout, T*Cin)
        b = in_refs[p + 1][...]               # (Cout, 1)
        p += 2
        sel = None
        if st['has_sel']:
            sel = in_refs[p][...]             # (src, mp_out)
            p += 1

        taps, mv, W = st['taps'], st['mv'], st['W']
        cin = x.shape[0]
        if len(taps) == 1:                    # 1x1 conv: activation is already compact
            stacked = x[:, :mv]
        else:                                 # stack shifted tap slices along sublanes
            sref = scratch[s]
            s += 1
            for t, d in enumerate(taps):
                sref[t * cin:(t + 1) * cin, :] = x[:, d:d + mv]
            stacked = sref[...]

        acc = jnp.dot(w, stacked, preferred_element_type=jnp.float32)   # (Cout, mv) wide

        if st['pool']:
            # 2x2 window max via shifted elementwise maxima (VPU work, no MXU):
            # m[:, i] = max(acc[i], acc[i+1], acc[i+W], acc[i+W+1])
            m = jnp.maximum(acc[:, :mv - 1], acc[:, 1:mv])
            m = jnp.maximum(m[:, :mv - 1 - W], m[:, W:mv - 1])
        else:
            m = acc

        if sel is not None:                   # single crop / stride-2 selection matmul
            y = jnp.dot(m, sel, preferred_element_type=jnp.float32)
        else:
            y = m
        y = jnp.maximum(y + b, 0.0)           # folded BN bias + ReLU (commutes with pool)

        if st['mask_to'] is not None:         # zero the pad lanes explicitly
            lane = jax.lax.broadcasted_iota(jnp.int32, y.shape, 1)
            y = jnp.where(lane < st['mask_to'], y, 0.0)
        x = y

    # Classifier head: global average pool (lane reduction) + fc1/BN/ReLU + fc2
    fc1_w = in_refs[p][...]                   # (32, F) BN-folded
    fc1_b = in_refs[p + 1][...]               # (32, 1)
    fc2_w = in_refs[p + 2][...]               # (ncls, 32)
    feat = jnp.sum(x[:, :n_valid_last], axis=1, keepdims=True) * (1.0 / n_valid_last)
    z = jnp.maximum(jnp.dot(fc1_w, feat, preferred_element_type=jnp.float32) + fc1_b, 0.0)
    o_ref[...] = jnp.dot(fc2_w, z, preferred_element_type=jnp.float32)   # (ncls, 1)


def fused_forward(x_nchw, stages, head_params, n_valid_last):
    """x_nchw: (N, C, H, W) -> logits (N, ncls), single pallas_call."""
    N, C, H, W = x_nchw.shape
    st0 = stages[0]
    x = x_nchw.reshape(N, C, H * W).astype(jnp.float32)
    if st0['cin'] > C:                                    # pad channels to sublane multiple
        x = jnp.pad(x, ((0, 0), (0, st0['cin'] - C), (0, 0)))
    x = jnp.pad(x, ((0, 0), (0, 0), (0, st0['mp_in'] - H * W)))

    fc1_w, fc1_b, fc2_w = head_params
    ncls = fc2_w.shape[0]

    inputs = [x]
    in_specs = [pl.BlockSpec((None, st0['cin'], st0['mp_in']), lambda n: (n, 0, 0))]
    kmeta = []
    for st in stages:
        inputs.append(st['w'])
        in_specs.append(pl.BlockSpec(st['w'].shape, lambda n: (0, 0)))
        inputs.append(st['b'])
        in_specs.append(pl.BlockSpec(st['b'].shape, lambda n: (0, 0)))
        has_sel = st['sel'] is not None
        if has_sel:
            inputs.append(st['sel'])
            in_specs.append(pl.BlockSpec(st['sel'].shape, lambda n: (0, 0)))
        kmeta.append(dict(taps=st['taps'], mv=st['mv'], W=st['W'],
                          pool=st['pool'], has_sel=has_sel, mask_to=st['mask_to']))
    for arr in (fc1_w, fc1_b, fc2_w):
        inputs.append(arr)
        in_specs.append(pl.BlockSpec(arr.shape, lambda n: (0, 0)))

    scratch_shapes = [pltpu.VMEM((len(st['taps']) * st['cin'], st['mv']), jnp.float32)
                      for st in stages if len(st['taps']) > 1]

    kernel = functools.partial(_fused_forward_kernel,
                               stages=tuple(kmeta), n_valid_last=n_valid_last)

    out = pl.pallas_call(
        kernel,
        grid=(N,),
        in_specs=in_specs,
        out_specs=pl.BlockSpec((None, ncls, 1), lambda n: (n, 0, 0)),
        out_shape=jax.ShapeDtypeStruct((N, ncls, 1), jnp.float32),
        scratch_shapes=scratch_shapes,
        compiler_params=pltpu.CompilerParams(
            dimension_semantics=("parallel",)),
    )(*inputs)
    return out[:, :, 0]


# ----------------------------------------------------------------------------
# Trace-time folding: BN, input pre-scale, SVD pairs, pooling selection
# ----------------------------------------------------------------------------

def bn_fold(gamma, beta, mean, var):
    s = gamma / jnp.sqrt(var + EPS)
    return s, beta - mean * s


def fold_features(feat_params):
    """-> list of ('conv', w4d, bias) / ('mp',) with BN folded, SVD composed,
    and the 2*x-1 input pre-scale folded into the first conv."""
    out = []
    for p in feat_params:
        if p[0] == 'mp':
            out.append(('mp',))
        elif p[0] == 'conv':
            _, w, bn = p
            s, b = bn_fold(*bn)
            out.append(('conv', w * s[:, None, None, None], b))
        else:  # svd: (kh,1) conv + BN  then (1,kw) conv + BN (no ReLU between)
            _, w1, bn1, w2, bn2 = p
            s1, b1 = bn_fold(*bn1)
            s2, b2 = bn_fold(*bn2)
            w_eff = jnp.einsum('omj,m,mci->ocij', w2[:, :, 0, :], s1, w1[:, :, :, 0])
            w_eff = w_eff * s2[:, None, None, None]
            bias = s2 * jnp.einsum('omj,m->o', w2[:, :, 0, :], b1) + b2
            out.append(('conv', w_eff, bias))

    # fold x' = 2x - 1 into the first conv (maxpool commutes with 2x-1)
    for idx, item in enumerate(out):
        if item[0] == 'conv':
            _, w, b = item
            out[idx] = ('conv', 2.0 * w, b - jnp.sum(w, axis=(1, 2, 3)))
            break
    return out


def make_sel(g, mp_out, W):
    """Single 0/1 selection matrix.  Pool case: maps the window-maxed wide
    accumulator (stride-2 picks) to the compact pooled layout.  Crop case:
    maps the wide conv accumulator to the compact valid layout."""
    Hc, Wc, Ho, Wo, pool = g['Hc'], g['Wc'], g['Ho'], g['Wo'], g['pool']
    mv = g['H'] * g['W']
    if pool:
        src = mv - 1 - W
        sel = np.zeros((src, mp_out), np.float32)
        for p in range(Ho):
            for q in range(Wo):
                sel[(2 * p) * W + 2 * q, p * Wo + q] = 1.0
        valid = Ho * Wo
    else:
        sel = np.zeros((mv, mp_out), np.float32)
        for hc in range(Hc):
            for wc in range(Wc):
                sel[hc * W + wc, hc * Wc + wc] = 1.0
        valid = Hc * Wc
    return jnp.asarray(sel), valid


def build_plan(folded, H, W):
    """Group conv (+ following maxpool) into fused stages and precompute the
    per-stage geometry, tap offsets, stacked folded weights and selection."""
    groups = []
    i = 0
    while i < len(folded):
        if folded[i][0] != 'conv':
            raise SystemExit("maxpool without a preceding conv is not supported")
        pool = (i + 1 < len(folded)) and folded[i + 1][0] == 'mp'
        groups.append((folded[i][1], folded[i][2], pool))
        i += 2 if pool else 1

    geo = []
    h, w_sp = H, W
    for (wt, bias, pool) in groups:
        cout, cin, kh, kw = wt.shape
        hc, wc = h - kh + 1, w_sp - kw + 1
        ho, wo = (hc // 2, wc // 2) if pool else (hc, wc)
        geo.append(dict(kh=kh, kw=kw, H=h, W=w_sp, Hc=hc, Wc=wc,
                        Ho=ho, Wo=wo, pool=pool))
        h, w_sp = ho, wo

    stages = []
    for k, ((wt, bias, pool), g) in enumerate(zip(groups, geo)):
        cout, cin, kh, kw = wt.shape
        H_, W_ = g['H'], g['W']
        mv = H_ * W_                              # "wide" accumulator width
        dmax = (kh - 1) * W_ + (kw - 1)           # largest tap lane offset
        mp_in = mv + dmax                         # per-image padded input width
        if k + 1 < len(geo):
            gn = geo[k + 1]
            mp_out = gn['H'] * gn['W'] + (gn['kh'] - 1) * gn['W'] + (gn['kw'] - 1)
        else:
            mp_out = g['Ho'] * g['Wo']

        cin_pad = ((cin + 7) // 8) * 8 if k == 0 else cin
        wt_p = wt
        if cin_pad > cin:
            wt_p = jnp.pad(wt, ((0, 0), (0, cin_pad - cin), (0, 0), (0, 0)))
        # stacked weight: column order (tap ii*kw+jj, channel c)
        w_flat = jnp.transpose(wt_p, (0, 2, 3, 1)).reshape(cout, kh * kw * cin_pad)
        taps = tuple(ii * W_ + jj for ii in range(kh) for jj in range(kw))

        need_sel = pool or kh > 1 or kw > 1 or (mp_out != mv)
        if need_sel:
            sel, valid = make_sel(g, mp_out, W_)
        else:
            sel, valid = None, mv
        stages.append(dict(
            w=w_flat.astype(jnp.float32),
            b=bias.reshape(cout, 1).astype(jnp.float32),
            sel=sel, taps=taps, mv=mv, W=W_, pool=pool,
            mp_in=mp_in, mp_out=mp_out,
            mask_to=(valid if valid < mp_out else None),
            cin=cin_pad, cout=cout))
    return stages, geo


def fold_head(cls_params):
    fc1, bn1, fc2 = cls_params
    s1, b1 = bn_fold(*bn1)
    w1 = (fc1 * s1[:, None]).astype(jnp.float32)
    return w1, b1.reshape(-1, 1).astype(jnp.float32), fc2.astype(jnp.float32)


# ----------------------------------------------------------------------------
# Deterministic synthetic parameters (eval-mode BatchNorm)
# ----------------------------------------------------------------------------

def init_conv(key, cout, cin, kh, kw):
    return 0.1 * jax.random.normal(key, (cout, cin, kh, kw), jnp.float32)


def init_bn(key, c):
    k1, k2, k3, k4 = jax.random.split(key, 4)
    gamma = 1.0 + 0.1 * jax.random.normal(k1, (c,), jnp.float32)
    beta = 0.1 * jax.random.normal(k2, (c,), jnp.float32)
    mean = 0.1 * jax.random.normal(k3, (c,), jnp.float32)
    var = jnp.abs(jax.random.normal(k4, (c,), jnp.float32)) + 0.5
    return gamma, beta, mean, var


def build_params(cfgs, num_classes, key):
    feats = []
    for cfg in cfgs:
        if cfg[0] == "mp":
            feats.append(("mp",))
            continue
        layer_type, ch = cfg
        key, k0, k1, k2, k3 = jax.random.split(key, 5)
        if layer_type == "conv3x3":
            inp, oup = ch
            feats.append(("conv", init_conv(k0, oup, inp, 3, 3), init_bn(k1, oup)))
        elif layer_type == "conv1x1":
            inp, oup = ch
            feats.append(("conv", init_conv(k0, oup, inp, 1, 1), init_bn(k1, oup)))
        elif layer_type == "svd_conv3x3":
            inp, mid, oup = ch
            feats.append(("svd",
                          init_conv(k0, mid, inp, 3, 1), init_bn(k1, mid),
                          init_conv(k2, oup, mid, 1, 3), init_bn(k3, oup)))
        elif layer_type == "svd_conv1x1":
            inp, mid, oup = ch
            feats.append(("svd",
                          init_conv(k0, mid, inp, 1, 1), init_bn(k1, mid),
                          init_conv(k2, oup, mid, 1, 1), init_bn(k3, oup)))
        else:
            raise SystemExit("Error in config definition")
    key, k1, k2, k3 = jax.random.split(key, 4)
    fc1 = 0.1 * jax.random.normal(k1, (32, 64), jnp.float32)   # torch Linear (out, in)
    bn1 = init_bn(k2, 32)
    fc2 = 0.1 * jax.random.normal(k3, (num_classes, 32), jnp.float32)
    return feats, (fc1, bn1, fc2)


# ----------------------------------------------------------------------------
# NumPy (float64) reference mirroring the PyTorch module in eval mode
# ----------------------------------------------------------------------------

def np_forward(x, feat_params, cls_params):
    def to_np(a):
        return np.asarray(a, np.float64)

    def bn(y, g, b, m, v):
        g, b, m, v = map(to_np, (g, b, m, v))
        s = g / np.sqrt(v + EPS)
        return y * s[None, :, None, None] + (b - m * s)[None, :, None, None]

    def conv(y, w):
        w = to_np(w)
        n, c, hh, ww = y.shape
        co, ci, kh, kw = w.shape
        ho, wo = hh - kh + 1, ww - kw + 1
        out = np.zeros((n, co, ho, wo), np.float64)
        for i in range(kh):
            for j in range(kw):
                out += np.einsum('nchw,oc->nohw', y[:, :, i:i + ho, j:j + wo],
                                 w[:, :, i, j])
        return out

    x = 2.0 * to_np(x) - 1.0
    for p in feat_params:
        if p[0] == 'mp':
            n, c, hh, ww = x.shape
            ho, wo = hh // 2, ww // 2
            x = x[:, :, :2 * ho, :2 * wo].reshape(n, c, ho, 2, wo, 2).max(axis=(3, 5))
        elif p[0] == 'conv':
            _, w, bnp = p
            x = np.maximum(bn(conv(x, w), *bnp), 0.0)
        else:
            _, w1, bn1p, w2, bn2p = p
            x = bn(conv(x, w1), *bn1p)
            x = np.maximum(bn(conv(x, w2), *bn2p), 0.0)
    x = x.mean(axis=(2, 3))                       # global avg pool -> (N, F)
    fc1, bn1p, fc2 = cls_params
    z = x @ to_np(fc1).T
    g, b, m, v = map(to_np, bn1p)
    s = g / np.sqrt(v + EPS)
    z = np.maximum(z * s[None, :] + (b - m * s)[None, :], 0.0)
    return z @ to_np(fc2).T


# ----------------------------------------------------------------------------

if __name__ == "__main__":
    # Representative config; final feature width must be 64 (classifier in=64).
    MODEL_CFG = [
        ("conv3x3", (3, 16)),
        ("mp",),
        ("svd_conv3x3", (16, 8, 32)),
        ("mp",),
        ("svd_conv1x1", (32, 16, 64)),
        ("conv1x1", (64, 64)),
    ]
    NUM_CLASSES = 2

    key = jax.random.PRNGKey(0)
    key, pkey, xkey = jax.random.split(key, 3)
    feat_params, cls_params = build_params(MODEL_CFG, NUM_CLASSES, pkey)

    x = jax.random.uniform(xkey, (2, 3, 16, 16), jnp.float32)   # NCHW like PyTorch

    folded = fold_features(feat_params)
    N, C, H, W = x.shape
    stages, geo = build_plan(folded, H, W)
    head_params = fold_head(cls_params)
    valid_last = geo[-1]['Ho'] * geo[-1]['Wo']

    @jax.jit
    def fwd(xin):
        return fused_forward(xin, stages, head_params, valid_last)

    out = fwd(x)
    jax.block_until_ready(out)
    assert out.shape == (2, NUM_CLASSES)

    ref = np_forward(np.asarray(x), feat_params, cls_params)
    if not np.allclose(np.asarray(out), ref, rtol=2e-2, atol=2e-2):
        raise AssertionError(
            f"mismatch vs reference, max abs err "
            f"{np.max(np.abs(np.asarray(out) - ref)):.3e}")
    print("KERNEL_OK")
</pallas_src>

<mosaic_0001>
module attributes {stable_mosaic.version = 11 : i64} {
  func.func @_fused_forward_kernel(%arg0: i32, %arg1: memref<1x8x290xf32, #tpu.memory_space<vmem>>, %arg2: memref<16x72xf32, #tpu.memory_space<vmem>>, %arg3: memref<16x1xf32, #tpu.memory_space<vmem>>, %arg4: memref<239x65xf32, #tpu.memory_space<vmem>>, %arg5: memref<32x144xf32, #tpu.memory_space<vmem>>, %arg6: memref<32x1xf32, #tpu.memory_space<vmem>>, %arg7: memref<41x4xf32, #tpu.memory_space<vmem>>, %arg8: memref<64x32xf32, #tpu.memory_space<vmem>>, %arg9: memref<64x1xf32, #tpu.memory_space<vmem>>, %arg10: memref<64x64xf32, #tpu.memory_space<vmem>>, %arg11: memref<64x1xf32, #tpu.memory_space<vmem>>, %arg12: memref<32x64xf32, #tpu.memory_space<vmem>>, %arg13: memref<32x1xf32, #tpu.memory_space<vmem>>, %arg14: memref<2x32xf32, #tpu.memory_space<vmem>>, %arg15: memref<1x2x1xf32, #tpu.memory_space<vmem>>, %arg16: memref<72x256xf32, #tpu.memory_space<vmem>>, %arg17: memref<144x49xf32, #tpu.memory_space<vmem>>) attributes {dimension_semantics = [#tpu.dimension_semantics<parallel>], iteration_bounds = array<i64: 2>, scalar_prefetch = 0 : i64, scratch_operands = 2 : i64, tpu.core_type = #tpu.core_type<tc>, window_params = [{transform_indices = @transform_0, window_bounds = array<i64: 1, 8, 290>}, {pipeline_mode = #tpu.pipeline_mode<synchronous>, transform_indices = @transform_1, window_bounds = array<i64: 16, 72>}, {pipeline_mode = #tpu.pipeline_mode<synchronous>, transform_indices = @transform_2, window_bounds = array<i64: 16, 1>}, {pipeline_mode = #tpu.pipeline_mode<synchronous>, transform_indices = @transform_3, window_bounds = array<i64: 239, 65>}, {pipeline_mode = #tpu.pipeline_mode<synchronous>, transform_indices = @transform_4, window_bounds = array<i64: 32, 144>}, {pipeline_mode = #tpu.pipeline_mode<synchronous>, transform_indices = @transform_5, window_bounds = array<i64: 32, 1>}, {pipeline_mode = #tpu.pipeline_mode<synchronous>, transform_indices = @transform_6, window_bounds = array<i64: 41, 4>}, {pipeline_mode = #tpu.pipeline_mode<synchronous>, transform_indices = @transform_7, window_bounds = array<i64: 64, 32>}, {pipeline_mode = #tpu.pipeline_mode<synchronous>, transform_indices = @transform_8, window_bounds = array<i64: 64, 1>}, {pipeline_mode = #tpu.pipeline_mode<synchronous>, transform_indices = @transform_9, window_bounds = array<i64: 64, 64>}, {pipeline_mode = #tpu.pipeline_mode<synchronous>, transform_indices = @transform_10, window_bounds = array<i64: 64, 1>}, {pipeline_mode = #tpu.pipeline_mode<synchronous>, transform_indices = @transform_11, window_bounds = array<i64: 32, 64>}, {pipeline_mode = #tpu.pipeline_mode<synchronous>, transform_indices = @transform_12, window_bounds = array<i64: 32, 1>}, {pipeline_mode = #tpu.pipeline_mode<synchronous>, transform_indices = @transform_13, window_bounds = array<i64: 2, 32>}, {transform_indices = @transform_14, window_bounds = array<i64: 1, 2, 1>}]} {
    %c0 = arith.constant 0 : index
    %c0_0 = arith.constant 0 : index
    %c0_1 = arith.constant 0 : index
    %0 = vector.load %arg1[%c0, %c0_0, %c0_1] : memref<1x8x290xf32, #tpu.memory_space<vmem>>, vector<1x8x290xf32>
    %1 = vector.shape_cast %0 : vector<1x8x290xf32> to vector<8x290xf32>
    %c0_2 = arith.constant 0 : index
    %c0_3 = arith.constant 0 : index
    %2 = vector.load %arg2[%c0_2, %c0_3] : memref<16x72xf32, #tpu.memory_space<vmem>>, vector<16x72xf32>
    %c0_4 = arith.constant 0 : index
    %c0_5 = arith.constant 0 : index
    %3 = vector.load %arg3[%c0_4, %c0_5] : memref<16x1xf32, #tpu.memory_space<vmem>>, vector<16x1xf32>
    %c0_6 = arith.constant 0 : index
    %c0_7 = arith.constant 0 : index
    %4 = vector.load %arg4[%c0_6, %c0_7] : memref<239x65xf32, #tpu.memory_space<vmem>>, vector<239x65xf32>
    %5 = vector.extract_strided_slice %1 {offsets = [0, 0], sizes = [8, 256], strides = [1, 1]} : vector<8x290xf32> to vector<8x256xf32>
    %c0_8 = arith.constant 0 : index
    %c0_9 = arith.constant 0 : index
    %6 = vector.load %arg16[%c0_8, %c0_9] : memref<72x256xf32, #tpu.memory_space<vmem>>, vector<8x256xf32>
    tpu.vector_store %arg16[%c0_8, %c0_9], %5 {strides = array<i32>} : memref<72x256xf32, #tpu.memory_space<vmem>>, vector<8x256xf32>,
    %7 = vector.extract_strided_slice %1 {offsets = [0, 1], sizes = [8, 256], strides = [1, 1]} : vector<8x290xf32> to vector<8x256xf32>
    %c8 = arith.constant 8 : index
    %c0_10 = arith.constant 0 : index
    %8 = vector.load %arg16[%c8, %c0_10] : memref<72x256xf32, #tpu.memory_space<vmem>>, vector<8x256xf32>
    tpu.vector_store %arg16[%c8, %c0_10], %7 {strides = array<i32>} : memref<72x256xf32, #tpu.memory_space<vmem>>, vector<8x256xf32>,
    %9 = vector.extract_strided_slice %1 {offsets = [0, 2], sizes = [8, 256], strides = [1, 1]} : vector<8x290xf32> to vector<8x256xf32>
    %c16 = arith.constant 16 : index
    %c0_11 = arith.constant 0 : index
    %10 = vector.load %arg16[%c16, %c0_11] : memref<72x256xf32, #tpu.memory_space<vmem>>, vector<8x256xf32>
    tpu.vector_store %arg16[%c16, %c0_11], %9 {strides = array<i32>} : memref<72x256xf32, #tpu.memory_space<vmem>>, vector<8x256xf32>,
    %11 = vector.extract_strided_slice %1 {offsets = [0, 16], sizes = [8, 256], strides = [1, 1]} : vector<8x290xf32> to vector<8x256xf32>
    %c24 = arith.constant 24 : index
    %c0_12 = arith.constant 0 : index
    %12 = vector.load %arg16[%c24, %c0_12] : memref<72x256xf32, #tpu.memory_space<vmem>>, vector<8x256xf32>
    tpu.vector_store %arg16[%c24, %c0_12], %11 {strides = array<i32>} : memref<72x256xf32, #tpu.memory_space<vmem>>, vector<8x256xf32>,
    %13 = vector.extract_strided_slice %1 {offsets = [0, 17], sizes = [8, 256], strides = [1, 1]} : vector<8x290xf32> to vector<8x256xf32>
    %c32 = arith.constant 32 : index
    %c0_13 = arith.constant 0 : index
    %14 = vector.load %arg16[%c32, %c0_13] : memref<72x256xf32, #tpu.memory_space<vmem>>, vector<8x256xf32>
    tpu.vector_store %arg16[%c32, %c0_13], %13 {strides = array<i32>} : memref<72x256xf32, #tpu.memory_space<vmem>>, vector<8x256xf32>,
    %15 = vector.extract_strided_slice %1 {offsets = [0, 18], sizes = [8, 256], strides = [1, 1]} : vector<8x290xf32> to vector<8x256xf32>
    %c40 = arith.constant 40 : index
    %c0_14 = arith.constant 0 : index
    %16 = vector.load %arg16[%c40, %c0_14] : memref<72x256xf32, #tpu.memory_space<vmem>>, vector<8x256xf32>
    tpu.vector_store %arg16[%c40, %c0_14], %15 {strides = array<i32>} : memref<72x256xf32, #tpu.memory_space<vmem>>, vector<8x256xf32>,
    %17 = vector.extract_strided_slice %1 {offsets = [0, 32], sizes = [8, 256], strides = [1, 1]} : vector<8x290xf32> to vector<8x256xf32>
    %c48 = arith.constant 48 : index
    %c0_15 = arith.constant 0 : index
    %18 = vector.load %arg16[%c48, %c0_15] : memref<72x256xf32, #tpu.memory_space<vmem>>, vector<8x256xf32>
    tpu.vector_store %arg16[%c48, %c0_15], %17 {strides = array<i32>} : memref<72x256xf32, #tpu.memory_space<vmem>>, vector<8x256xf32>,
    %19 = vector.extract_strided_slice %1 {offsets = [0, 33], sizes = [8, 256], strides = [1, 1]} : vector<8x290xf32> to vector<8x256xf32>
    %c56 = arith.constant 56 : index
    %c0_16 = arith.constant 0 : index
    %20 = vector.load %arg16[%c56, %c0_16] : memref<72x256xf32, #tpu.memory_space<vmem>>, vector<8x256xf32>
    tpu.vector_store %arg16[%c56, %c0_16], %19 {strides = array<i32>} : memref<72x256xf32, #tpu.memory_space<vmem>>, vector<8x256xf32>,
    %21 = vector.extract_strided_slice %1 {offsets = [0, 34], sizes = [8, 256], strides = [1, 1]} : vector<8x290xf32> to vector<8x256xf32>
    %c64 = arith.constant 64 : index
    %c0_17 = arith.constant 0 : index
    %22 = vector.load %arg16[%c64, %c0_17] : memref<72x256xf32, #tpu.memory_space<vmem>>, vector<8x256xf32>
    tpu.vector_store %arg16[%c64, %c0_17], %21 {strides = array<i32>} : memref<72x256xf32, #tpu.memory_space<vmem>>, vector<8x256xf32>,
    %c0_18 = arith.constant 0 : index
    %c0_19 = arith.constant 0 : index
    %23 = vector.load %arg16[%c0_18, %c0_19] : memref<72x256xf32, #tpu.memory_space<vmem>>, vector<72x256xf32>
    %cst = arith.constant dense<0.000000e+00> : vector<16x256xf32>
    %24 = tpu.matmul %2, %23, %cst {dimension_numbers = #tpu.dot_dimension_numbers<[1], [0], [0], [1], [0, 0, 1, 1], [], []>} : vector<16x72xf32>, vector<72x256xf32>, vector<16x256xf32> -> vector<16x256xf32>
    %25 = vector.extract_strided_slice %24 {offsets = [0, 0], sizes = [16, 255], strides = [1, 1]} : vector<16x256xf32> to vector<16x255xf32>
    %26 = vector.extract_strided_slice %24 {offsets = [0, 1], sizes = [16, 255], strides = [1, 1]} : vector<16x256xf32> to vector<16x255xf32>
    %27 = arith.maximumf %25, %26 : vector<16x255xf32>
    %28 = vector.extract_strided_slice %27 {offsets = [0, 0], sizes = [16, 239], strides = [1, 1]} : vector<16x255xf32> to vector<16x239xf32>
    %29 = vector.extract_strided_slice %27 {offsets = [0, 16], sizes = [16, 239], strides = [1, 1]} : vector<16x255xf32> to vector<16x239xf32>
    %30 = arith.maximumf %28, %29 : vector<16x239xf32>
    %cst_20 = arith.constant dense<0.000000e+00> : vector<16x65xf32>
    %31 = tpu.matmul %30, %4, %cst_20 {dimension_numbers = #tpu.dot_dimension_numbers<[1], [0], [0], [1], [0, 0, 1, 1], [], []>} : vector<16x239xf32>, vector<239x65xf32>, vector<16x65xf32> -> vector<16x65xf32>
    %32 = vector.broadcast %3 : vector<16x1xf32> to vector<16x65xf32>
    %33 = arith.addf %31, %32 : vector<16x65xf32>
    %cst_21 = arith.constant 0.000000e+00 : f32
    %34 = vector.broadcast %cst_21 : f32 to vector<16x65xf32>
    %35 = arith.maximumf %33, %34 : vector<16x65xf32>
    %36 = tpu.iota {dimensions = array<i32: 1>} : vector<16x65xi32>
    %c49_i32 = arith.constant 49 : i32
    %37 = vector.broadcast %c49_i32 : i32 to vector<16x65xi32>
    %38 = arith.cmpi slt, %36, %37 : vector<16x65xi32>
    %cst_22 = arith.constant 0.000000e+00 : f32
    %39 = vector.broadcast %cst_22 : f32 to vector<16x65xf32>
    %40 = arith.select %38, %35, %39 : vector<16x65xi1>, vector<16x65xf32>
    %c0_23 = arith.constant 0 : index
    %c0_24 = arith.constant 0 : index
    %41 = vector.load %arg5[%c0_23, %c0_24] : memref<32x144xf32, #tpu.memory_space<vmem>>, vector<32x144xf32>
    %c0_25 = arith.constant 0 : index
    %c0_26 = arith.constant 0 : index
    %42 = vector.load %arg6[%c0_25, %c0_26] : memref<32x1xf32, #tpu.memory_space<vmem>>, vector<32x1xf32>
    %c0_27 = arith.constant 0 : index
    %c0_28 = arith.constant 0 : index
    %43 = vector.load %arg7[%c0_27, %c0_28] : memref<41x4xf32, #tpu.memory_space<vmem>>, vector<41x4xf32>
    %44 = vector.extract_strided_slice %40 {offsets = [0, 0], sizes = [16, 49], strides = [1, 1]} : vector<16x65xf32> to vector<16x49xf32>
    %c0_29 = arith.constant 0 : index
    %c0_30 = arith.constant 0 : index
    %45 = vector.load %arg17[%c0_29, %c0_30] : memref<144x49xf32, #tpu.memory_space<vmem>>, vector<16x49xf32>
    tpu.vector_store %arg17[%c0_29, %c0_30], %44 {strides = array<i32>} : memref<144x49xf32, #tpu.memory_space<vmem>>, vector<16x49xf32>,
    %46 = vector.extract_strided_slice %40 {offsets = [0, 1], sizes = [16, 49], strides = [1, 1]} : vector<16x65xf32> to vector<16x49xf32>
    %c16_31 = arith.constant 16 : index
    %c0_32 = arith.constant 0 : index
    %47 = vector.load %arg17[%c16_31, %c0_32] : memref<144x49xf32, #tpu.memory_space<vmem>>, vector<16x49xf32>
    tpu.vector_store %arg17[%c16_31, %c0_32], %46 {strides = array<i32>} : memref<144x49xf32, #tpu.memory_space<vmem>>, vector<16x49xf32>,
    %48 = vector.extract_strided_slice %40 {offsets = [0, 2], sizes = [16, 49], strides = [1, 1]} : vector<16x65xf32> to vector<16x49xf32>
    %c32_33 = arith.constant 32 : index
    %c0_34 = arith.constant 0 : index
    %49 = vector.load %arg17[%c32_33, %c0_34] : memref<144x49xf32, #tpu.memory_space<vmem>>, vector<16x49xf32>
    tpu.vector_store %arg17[%c32_33, %c0_34], %48 {strides = array<i32>} : memref<144x49xf32, #tpu.memory_space<vmem>>, vector<16x49xf32>,
    %50 = vector.extract_strided_slice %40 {offsets = [0, 7], sizes = [16, 49], strides = [1, 1]} : vector<16x65xf32> to vector<16x49xf32>
    %c48_35 = arith.constant 48 : index
    %c0_36 = arith.constant 0 : index
    %51 = vector.load %arg17[%c48_35, %c0_36] : memref<144x49xf32, #tpu.memory_space<vmem>>, vector<16x49xf32>
    tpu.vector_store %arg17[%c48_35, %c0_36], %50 {strides = array<i32>} : memref<144x49xf32, #tpu.memory_space<vmem>>, vector<16x49xf32>,
    %52 = vector.extract_strided_slice %40 {offsets = [0, 8], sizes = [16, 49], strides = [1, 1]} : vector<16x65xf32> to vector<16x49xf32>
    %c64_37 = arith.constant 64 : index
    %c0_38 = arith.constant 0 : index
    %53 = vector.load %arg17[%c64_37, %c0_38] : memref<144x49xf32, #tpu.memory_space<vmem>>, vector<16x49xf32>
    tpu.vector_store %arg17[%c64_37, %c0_38], %52 {strides = array<i32>} : memref<144x49xf32, #tpu.memory_space<vmem>>, vector<16x49xf32>,
    %54 = vector.extract_strided_slice %40 {offsets = [0, 9], sizes = [16, 49], strides = [1, 1]} : vector<16x65xf32> to vector<16x49xf32>
    %c80 = arith.constant 80 : index
    %c0_39 = arith.constant 0 : index
    %55 = vector.load %arg17[%c80, %c0_39] : memref<144x49xf32, #tpu.memory_space<vmem>>, vector<16x49xf32>
    tpu.vector_store %arg17[%c80, %c0_39], %54 {strides = array<i32>} : memref<144x49xf32, #tpu.memory_space<vmem>>, vector<16x49xf32>,
    %56 = vector.extract_strided_slice %40 {offsets = [0, 14], sizes = [16, 49], strides = [1, 1]} : vector<16x65xf32> to vector<16x49xf32>
    %c96 = arith.constant 96 : index
    %c0_40 = arith.constant 0 : index
    %57 = vector.load %arg17[%c96, %c0_40] : memref<144x49xf32, #tpu.memory_space<vmem>>, vector<16x49xf32>
    tpu.vector_store %arg17[%c96, %c0_40], %56 {strides = array<i32>} : memref<144x49xf32, #tpu.memory_space<vmem>>, vector<16x49xf32>,
    %58 = vector.extract_strided_slice %40 {offsets = [0, 15], sizes = [16, 49], strides = [1, 1]} : vector<16x65xf32> to vector<16x49xf32>
    %c112 = arith.constant 112 : index
    %c0_41 = arith.constant 0 : index
    %59 = vector.load %arg17[%c112, %c0_41] : memref<144x49xf32, #tpu.memory_space<vmem>>, vector<16x49xf32>
    tpu.vector_store %arg17[%c112, %c0_41], %58 {strides = array<i32>} : memref<144x49xf32, #tpu.memory_space<vmem>>, vector<16x49xf32>,
    %60 = vector.extract_strided_slice %40 {offsets = [0, 16], sizes = [16, 49], strides = [1, 1]} : vector<16x65xf32> to vector<16x49xf32>
    %c128 = arith.constant 128 : index
    %c0_42 = arith.constant 0 : index
    %61 = vector.load %arg17[%c128, %c0_42] : memref<144x49xf32, #tpu.memory_space<vmem>>, vector<16x49xf32>
    tpu.vector_store %arg17[%c128, %c0_42], %60 {strides = array<i32>} : memref<144x49xf32, #tpu.memory_space<vmem>>, vector<16x49xf32>,
    %c0_43 = arith.constant 0 : index
    %c0_44 = arith.constant 0 : index
    %62 = vector.load %arg17[%c0_43, %c0_44] : memref<144x49xf32, #tpu.memory_space<vmem>>, vector<144x49xf32>
    %cst_45 = arith.constant dense<0.000000e+00> : vector<32x49xf32>
    %63 = tpu.matmul %41, %62, %cst_45 {dimension_numbers = #tpu.dot_dimension_numbers<[1], [0], [0], [1], [0, 0, 1, 1], [], []>} : vector<32x144xf32>, vector<144x49xf32>, vector<32x49xf32> -> vector<32x49xf32>
    %64 = vector.extract_strided_slice %63 {offsets = [0, 0], sizes = [32, 48], strides = [1, 1]} : vector<32x49xf32> to vector<32x48xf32>
    %65 = vector.extract_strided_slice %63 {offsets = [0, 1], sizes = [32, 48], strides = [1, 1]} : vector<32x49xf32> to vector<32x48xf32>
    %66 = arith.maximumf %64, %65 : vector<32x48xf32>
    %67 = vector.extract_strided_slice %66 {offsets = [0, 0], sizes = [32, 41], strides = [1, 1]} : vector<32x48xf32> to vector<32x41xf32>
    %68 = vector.extract_strided_slice %66 {offsets = [0, 7], sizes = [32, 41], strides = [1, 1]} : vector<32x48xf32> to vector<32x41xf32>
    %69 = arith.maximumf %67, %68 : vector<32x41xf32>
    %cst_46 = arith.constant dense<0.000000e+00> : vector<32x4xf32>
    %70 = tpu.matmul %69, %43, %cst_46 {dimension_numbers = #tpu.dot_dimension_numbers<[1], [0], [0], [1], [0, 0, 1, 1], [], []>} : vector<32x41xf32>, vector<41x4xf32>, vector<32x4xf32> -> vector<32x4xf32>
    %71 = vector.broadcast %42 : vector<32x1xf32> to vector<32x4xf32>
    %72 = arith.addf %70, %71 : vector<32x4xf32>
    %cst_47 = arith.constant 0.000000e+00 : f32
    %73 = vector.broadcast %cst_47 : f32 to vector<32x4xf32>
    %74 = arith.maximumf %72, %73 : vector<32x4xf32>
    %c0_48 = arith.constant 0 : index
    %c0_49 = arith.constant 0 : index
    %75 = vector.load %arg8[%c0_48, %c0_49] : memref<64x32xf32, #tpu.memory_space<vmem>>, vector<64x32xf32>
    %c0_50 = arith.constant 0 : index
    %c0_51 = arith.constant 0 : index
    %76 = vector.load %arg9[%c0_50, %c0_51] : memref<64x1xf32, #tpu.memory_space<vmem>>, vector<64x1xf32>
    %cst_52 = arith.constant dense<0.000000e+00> : vector<64x4xf32>
    %77 = tpu.matmul %75, %74, %cst_52 {dimension_numbers = #tpu.dot_dimension_numbers<[1], [0], [0], [1], [0, 0, 1, 1], [], []>} : vector<64x32xf32>, vector<32x4xf32>, vector<64x4xf32> -> vector<64x4xf32>
    %78 = vector.broadcast %76 : vector<64x1xf32> to vector<64x4xf32>
    %79 = arith.addf %77, %78 : vector<64x4xf32>
    %cst_53 = arith.constant 0.000000e+00 : f32
    %80 = vector.broadcast %cst_53 : f32 to vector<64x4xf32>
    %81 = arith.maximumf %79, %80 : vector<64x4xf32>
    %c0_54 = arith.constant 0 : index
    %c0_55 = arith.constant 0 : index
    %82 = vector.load %arg10[%c0_54, %c0_55] : memref<64x64xf32, #tpu.memory_space<vmem>>, vector<64x64xf32>
    %c0_56 = arith.constant 0 : index
    %c0_57 = arith.constant 0 : index
    %83 = vector.load %arg11[%c0_56, %c0_57] : memref<64x1xf32, #tpu.memory_space<vmem>>, vector<64x1xf32>
    %cst_58 = arith.constant dense<0.000000e+00> : vector<64x4xf32>
    %84 = tpu.matmul %82, %81, %cst_58 {dimension_numbers = #tpu.dot_dimension_numbers<[1], [0], [0], [1], [0, 0, 1, 1], [], []>} : vector<64x64xf32>, vector<64x4xf32>, vector<64x4xf32> -> vector<64x4xf32>
    %85 = vector.broadcast %83 : vector<64x1xf32> to vector<64x4xf32>
    %86 = arith.addf %84, %85 : vector<64x4xf32>
    %cst_59 = arith.constant 0.000000e+00 : f32
    %87 = vector.broadcast %cst_59 : f32 to vector<64x4xf32>
    %88 = arith.maximumf %86, %87 : vector<64x4xf32>
    %c0_60 = arith.constant 0 : index
    %c0_61 = arith.constant 0 : index
    %89 = vector.load %arg12[%c0_60, %c0_61] : memref<32x64xf32, #tpu.memory_space<vmem>>, vector<32x64xf32>
    %c0_62 = arith.constant 0 : index
    %c0_63 = arith.constant 0 : index
    %90 = vector.load %arg13[%c0_62, %c0_63] : memref<32x1xf32, #tpu.memory_space<vmem>>, vector<32x1xf32>
    %c0_64 = arith.constant 0 : index
    %c0_65 = arith.constant 0 : index
    %91 = vector.load %arg14[%c0_64, %c0_65] : memref<2x32xf32, #tpu.memory_space<vmem>>, vector<2x32xf32>
    %cst_66 = arith.constant dense<0.000000e+00> : vector<64xf32>
    %92 = vector.multi_reduction <add>, %88, %cst_66 [1] : vector<64x4xf32> to vector<64xf32>
    %93 = vector.shape_cast %92 : vector<64xf32> to vector<64x1xf32>
    %cst_67 = arith.constant 2.500000e-01 : f32
    %94 = vector.broadcast %cst_67 : f32 to vector<64x1xf32>
    %95 = arith.mulf %93, %94 : vector<64x1xf32>
    %cst_68 = arith.constant dense<0.000000e+00> : vector<32x1xf32>
    %96 = tpu.matmul %89, %95, %cst_68 {dimension_numbers = #tpu.dot_dimension_numbers<[1], [0], [0], [1], [0, 0, 1, 1], [], []>} : vector<32x64xf32>, vector<64x1xf32>, vector<32x1xf32> -> vector<32x1xf32>
    %97 = arith.addf %96, %90 : vector<32x1xf32>
    %cst_69 = arith.constant 0.000000e+00 : f32
    %98 = vector.broadcast %cst_69 : f32 to vector<32x1xf32>
    %99 = arith.maximumf %97, %98 : vector<32x1xf32>
    %cst_70 = arith.constant dense<0.000000e+00> : vector<2x1xf32>
    %100 = tpu.matmul %91, %99, %cst_70 {dimension_numbers = #tpu.dot_dimension_numbers<[1], [0], [0], [1], [0, 0, 1, 1], [], []>} : vector<2x32xf32>, vector<32x1xf32>, vector<2x1xf32> -> vector<2x1xf32>
    %c0_71 = arith.constant 0 : index
    %c0_72 = arith.constant 0 : index
    %c0_73 = arith.constant 0 : index
    %101 = vector.load %arg15[%c0_71, %c0_72, %c0_73] : memref<1x2x1xf32, #tpu.memory_space<vmem>>, vector<1x2x1xf32>
    %102 = vector.shape_cast %101 : vector<1x2x1xf32> to vector<2x1xf32>
    %103 = vector.shape_cast %100 : vector<2x1xf32> to vector<1x2x1xf32>
    tpu.vector_store %arg15[%c0_71, %c0_72, %c0_73], %103 {strides = array<i32>} : memref<1x2x1xf32, #tpu.memory_space<vmem>>, vector<1x2x1xf32>,
    return
  }
  func.func @transform_0(%arg0: i32) -> (i32, i32, i32) {
    %c0_i32 = arith.constant 0 : i32
    %c0_i32_0 = arith.constant 0 : i32
    %c0_i32_1 = arith.constant 0 : i32
    return %arg0, %c0_i32, %c0_i32_0 : i32, i32, i32
  }
  func.func @transform_1(%arg0: i32) -> (i32, i32) {
    %c0_i32 = arith.constant 0 : i32
    %c0_i32_0 = arith.constant 0 : i32
    %c0_i32_1 = arith.constant 0 : i32
    return %c0_i32, %c0_i32_0 : i32, i32
  }
  func.func @transform_2(%arg0: i32) -> (i32, i32) {
    %c0_i32 = arith.constant 0 : i32
    %c0_i32_0 = arith.constant 0 : i32
    %c0_i32_1 = arith.constant 0 : i32
    return %c0_i32, %c0_i32_0 : i32, i32
  }
  func.func @transform_3(%arg0: i32) -> (i32, i32) {
    %c0_i32 = arith.constant 0 : i32
    %c0_i32_0 = arith.constant 0 : i32
    %c0_i32_1 = arith.constant 0 : i32
    return %c0_i32, %c0_i32_0 : i32, i32
  }
  func.func @transform_4(%arg0: i32) -> (i32, i32) {
    %c0_i32 = arith.constant 0 : i32
    %c0_i32_0 = arith.constant 0 : i32
    %c0_i32_1 = arith.constant 0 : i32
    return %c0_i32, %c0_i32_0 : i32, i32
  }
  func.func @transform_5(%arg0: i32) -> (i32, i32) {
    %c0_i32 = arith.constant 0 : i32
    %c0_i32_0 = arith.constant 0 : i32
    %c0_i32_1 = arith.constant 0 : i32
    return %c0_i32, %c0_i32_0 : i32, i32
  }
  func.func @transform_6(%arg0: i32) -> (i32, i32) {
    %c0_i32 = arith.constant 0 : i32
    %c0_i32_0 = arith.constant 0 : i32
    %c0_i32_1 = arith.constant 0 : i32
    return %c0_i32, %c0_i32_0 : i32, i32
  }
  func.func @transform_7(%arg0: i32) -> (i32, i32) {
    %c0_i32 = arith.constant 0 : i32
    %c0_i32_0 = arith.constant 0 : i32
    %c0_i32_1 = arith.constant 0 : i32
    return %c0_i32, %c0_i32_0 : i32, i32
  }
  func.func @transform_8(%arg0: i32) -> (i32, i32) {
    %c0_i32 = arith.constant 0 : i32
    %c0_i32_0 = arith.constant 0 : i32
    %c0_i32_1 = arith.constant 0 : i32
    return %c0_i32, %c0_i32_0 : i32, i32
  }
  func.func @transform_9(%arg0: i32) -> (i32, i32) {
    %c0_i32 = arith.constant 0 : i32
    %c0_i32_0 = arith.constant 0 : i32
    %c0_i32_1 = arith.constant 0 : i32
    return %c0_i32, %c0_i32_0 : i32, i32
  }
  func.func @transform_10(%arg0: i32) -> (i32, i32) {
    %c0_i32 = arith.constant 0 : i32
    %c0_i32_0 = arith.constant 0 : i32
    %c0_i32_1 = arith.constant 0 : i32
    return %c0_i32, %c0_i32_0 : i32, i32
  }
  func.func @transform_11(%arg0: i32) -> (i32, i32) {
    %c0_i32 = arith.constant 0 : i32
    %c0_i32_0 = arith.constant 0 : i32
    %c0_i32_1 = arith.constant 0 : i32
    return %c0_i32, %c0_i32_0 : i32, i32
  }
  func.func @transform_12(%arg0: i32) -> (i32, i32) {
    %c0_i32 = arith.constant 0 : i32
    %c0_i32_0 = arith.constant 0 : i32
    %c0_i32_1 = arith.constant 0 : i32
    return %c0_i32, %c0_i32_0 : i32, i32
  }
  func.func @transform_13(%arg0: i32) -> (i32, i32) {
    %c0_i32 = arith.constant 0 : i32
    %c0_i32_0 = arith.constant 0 : i32
    %c0_i32_1 = arith.constant 0 : i32
    return %c0_i32, %c0_i32_0 : i32, i32
  }
  func.func @transform_14(%arg0: i32) -> (i32, i32, i32) {
    %c0_i32 = arith.constant 0 : i32
    %c0_i32_0 = arith.constant 0 : i32
    %c0_i32_1 = arith.constant 0 : i32
    return %arg0, %c0_i32, %c0_i32_0 : i32, i32, i32
  }
}

</mosaic_0001>

<bundles_post_ra>
// kernel: fwd.1
= control target key start
LH: loop header
LB: loop body
LE: loop exit
PB: predicated region body
PF: predicated region fallthrough
CT: control target
= control target key end

     0   :  { %s3428_s0 = inlined_call_operand.vmem [shape: f32[2,8,290], index: 0, kind: input, shape index: {}]   ;;  %s3429_s1 = inlined_call_operand.hbm [shape: f32[16,72], index: 1, kind: input, shape index: {}]   ;;  %s3430_s2 = inlined_call_operand.hbm [shape: f32[16,1], index: 2, kind: input, shape index: {}]   ;;  %s3431_s3 = inlined_call_operand.hbm [shape: f32[239,65], index: 3, kind: input, shape index: {}]   ;;  %s3432_s4 = inlined_call_operand.hbm [shape: f32[32,144], index: 4, kind: input, shape index: {}]   ;;  %s3433_s5 = inlined_call_operand.hbm [shape: f32[32,1], index: 5, kind: input, shape index: {}]   ;;  %s3434_s6 = inlined_call_operand.hbm [shape: f32[41,4], index: 6, kind: input, shape index: {}]   ;;  %s3435_s7 = inlined_call_operand.hbm [shape: f32[64,32], index: 7, kind: input, shape index: {}]   ;;  %s3436_s8 = inlined_call_operand.vmem [shape: f32[64,1], index: 8, kind: input, shape index: {}]   ;;  %s3437_s9 = inlined_call_operand.vmem [shape: f32[64,64], index: 9, kind: input, shape index: {}]   ;;  %s3438_s10 = inlined_call_operand.vmem [shape: f32[64,1], index: 10, kind: input, shape index: {}]   ;;  %s3439_s11 = inlined_call_operand.hbm [shape: f32[32,64], index: 11, kind: input, shape index: {}]   ;;  %s3440_s12 = inlined_call_operand.vmem [shape: f32[32,1], index: 12, kind: input, shape index: {}]   ;;  %s3441_s13 = inlined_call_operand.vmem [shape: f32[2,32], index: 13, kind: input, shape index: {}]   ;;  %s3442_s14 = inlined_call_operand.vmem [shape: f32[2,2,1], index: 14, kind: output, shape index: {}]  }
   0x1   :  { %3450 = sst [smem:[#allocation23_spill]] %s3430_s2 }
   0x2   :  { %3451 = sst [smem:[#allocation24_spill]] %s3441_s13 }
   0x3   :  { %3452 = sst [smem:[#allocation25_spill]] %s3442_s14 }
   0x4   :  { %19 = vsyncpa [#allocation5], 0 }
   0x5   :  { %20 = vsyncpa [#allocation7], 0 }
   0x6   :  { %21 = vsyncpa [#allocation10], 0 }
   0x7   :  { %22 = vsyncpa [#allocation13], 0 }
   0x8   :  { %23 = vsyncpa [#allocation16], 0  ;;  %s2953_s29 = smov 0  }
   0x9 LB: > { %3453 = sst [smem:[#allocation22_spill]] %s2846_s29  ;;  %s2959_s30 = sadd.s32 4294967295, %s2846_s29   ;;  %s2846_s29 = sphi %s2953_s29, %s29_s29  }
   0xa   : > { %p2086_p0 = scmp.ge.s32.totalorder %s2846_s29, 1  ;;  %p359_p1 = scmp.lt.s32.totalorder %s2846_s29, 3 }
   0xb   : > { %p3448_p2 = scmp.eq.s32.totalorder %s2959_s30, 0  ;;  %s2848_s16 = smov [#allocation6]  }
   0xc   : > { %p2964_p3 = pnand %p2086_p0, %p359_p1  ;;  %s384_s17 = sshll.u32 %s2848_s16, 4  ;;  %s2968_s17 = int_to_ptr.vmem [resolvable:$true] %s384_s17 }
   0xd   : > { %s2849_s18 = smov [#allocation9]   ;;  %s2850_s21 = smov [#allocation12]  }
   0xe   : > { %s3454_s15 = scalar_select %p2964_p3, 1, 0 }
   0xf   : > { %p2480_p4 = pneg %p2964_p3  ;;  %s410_s19 = sshll.u32 %s2849_s18, 4  ;;  %s2972_s19 = int_to_ptr.vmem [resolvable:$true] %s410_s19 }
  0x10   : > { %s2980_s22 = sshll.u32 %s2850_s21, 4  ;;  %s3456_s2 = sld [smem:[#allocation23_spill]]  ;;  %s437_s22 = int_to_ptr.vmem [resolvable:$true] %s2980_s22 }
  0x11   : > { %p2976_p5 = pnand %p3448_p2, %p2480_p4 }
  0x13   : > { %p2990_p7 = pneg %p2976_p5 }
  0x16   : > { %s2596_s25 = scalar_lea.hbm %s3456_s2, 256 }
  0x17   : > { %p2597_p6 = scmp.ne.s32.totalorder %s3456_s2, %s2596_s25  ;;  %p2603_p10 = scmp.lt.u32.totalorder %s2596_s25, %s3456_s2 }
  0x19   : > { %p2599_p8 = pnand %p2990_p7, %p2597_p6 }
  0x1b   : > { %p2600_p9 = pneg %p2599_p8 }
  0x1d   : > { %p2605_p11 = pnand %p2603_p10, %p2600_p9 }
  0x1f   : > { %2608 = shalt.err (!%p2605_p11)
}
  0x20   : > { %s2609_s21 = scalar_lea.vmem %s2968_s17, 256  ;;  %p2617_p1 = scmp.lt.s32.totalorder %s2968_s17, %s2968_s17 }
  0x21   : > { %p2610_p12 = scmp.ne.s32.totalorder %s2968_s17, %s2609_s21  ;;  %p2618_p4 = scmp.lt.s32.totalorder %s2609_s21, %s2609_s21 }
  0x23   : > { %p2612_p13 = pnand %p2610_p12, %p2990_p7  ;;  %p2619_p6 = por %p2618_p4, %p2617_p1 }
  0x25   : > { %p2613_p0 = pneg %p2612_p13 }
  0x27   : > { %p2620_p8 = pnand %p2619_p6, %p2613_p0 }
  0x29   : > { %2623 = shalt.err (!%p2620_p8)
}
  0x2a   : > { %s3444_s23 = smov 128   ;;  %s3446_s24 = smov 8  }
  0x2b   : > { %2486 = dma.hbm_to_vmem [thread:$0]  (!%p2976_p5), %s3456_s2, 256, %s2968_s17, [#allocation7], %s3444_s23, %s3444_s23, %s3446_s24  }
  0x2c   : > { %s2624_s18 = scalar_lea.hbm %s3432_s4, 1024 }
  0x2d   : > { %p2625_p9 = scmp.ne.s32.totalorder %s3432_s4, %s2624_s18  ;;  %p2631_p12 = scmp.lt.u32.totalorder %s2624_s18, %s3432_s4 }
  0x2f   : > { %p2627_p10 = pnand %p2625_p9, %p2990_p7 }
  0x31   : > { %p2628_p11 = pneg %p2627_p10 }
  0x33   : > { %p2633_p13 = pnand %p2631_p12, %p2628_p11 }
  0x35   : > { %2636 = shalt.err (!%p2633_p13)
}
  0x36   : > { %s2637_s17 = scalar_lea.vmem %s2972_s19, 1024  ;;  %p2645_p6 = scmp.lt.s32.totalorder %s2972_s19, %s2972_s19 }
  0x37   : > { %p2638_p0 = scmp.ne.s32.totalorder %s2972_s19, %s2637_s17  ;;  %p2646_p8 = scmp.lt.s32.totalorder %s2637_s17, %s2637_s17 }
  0x39   : > { %p2640_p1 = pnand %p2638_p0, %p2990_p7  ;;  %p2647_p9 = por %p2646_p8, %p2645_p6 }
  0x3b   : > { %p2641_p4 = pneg %p2640_p1 }
  0x3d   : > { %p2648_p10 = pnand %p2647_p9, %p2641_p4 }
  0x3f   : > { %2651 = shalt.err (!%p2648_p10)
}
  0x40   : > { %s2853_s29 = smov 256   ;;  %s2854_s13 = smov 16  }
  0x41   : > { %2492 = dma.hbm_to_vmem [thread:$0]  (!%p2976_p5), %s3432_s4, 1024, %s2972_s19, [#allocation10], %s2853_s29, %s2853_s29, %s2854_s13  }
  0x42   : > { %s2855_s26 = smov [#allocation4]   ;;  %s2652_s21 = scalar_lea.hbm %s3434_s6, 768 }
  0x43   : > { %s371_s27 = sshll.u32 %s2855_s26, 4  ;;  %p2653_p11 = scmp.ne.s32.totalorder %s3434_s6, %s2652_s21  ;;  %s372_s27 = int_to_ptr.vmem [resolvable:$true] %s371_s27 }
  0x44   : > { %p2659_p0 = scmp.lt.u32.totalorder %s2652_s21, %s3434_s6 }
  0x45   : > { %p2655_p12 = pnand %p2653_p11, %p2990_p7 }
  0x47   : > { %p2656_p13 = pneg %p2655_p12 }
  0x49   : > { %p2661_p1 = pnand %p2659_p0, %p2656_p13 }
  0x4b   : > { %2664 = shalt.err (!%p2661_p1)
}
  0x4c   : > { %s2665_s19 = scalar_lea.vmem %s437_s22, 768  ;;  %p2673_p9 = scmp.lt.s32.totalorder %s437_s22, %s437_s22 }
  0x4d   : > { %p2666_p4 = scmp.ne.s32.totalorder %s437_s22, %s2665_s19  ;;  %p2674_p10 = scmp.lt.s32.totalorder %s2665_s19, %s2665_s19 }
  0x4f   : > { %p2668_p6 = pnand %p2666_p4, %p2990_p7  ;;  %p2675_p2 = por %p2674_p10, %p2673_p9 }
  0x51   : > { %p2669_p8 = pneg %p2668_p6 }
  0x53   : > { %p2676_p3 = pnand %p2675_p2, %p2669_p8 }
  0x55   : > { %2679 = shalt.err (!%p2676_p3)
}
  0x56   : > { %s3458_s23 = smov 8   ;;  %s3459_s29 = smov 128  }
  0x57   : > { %2498 = dma.hbm_to_vmem [thread:$0]  (!%p2976_p5), %s3434_s6, 768, %s437_s22, [#allocation13], %s3459_s29, %s3459_s29, %s3458_s23  }
  0x58   : > { %s2680_s25 = scalar_lea.hbm %s3429_s1, 256 }
  0x59   : > { %p2681_p2 = scmp.ne.s32.totalorder %s3429_s1, %s2680_s25  ;;  %p2687_p12 = scmp.lt.u32.totalorder %s2680_s25, %s3429_s1 }
  0x5b   : > { %p2683_p3 = pnand %p2681_p2, %p2990_p7 }
  0x5d   : > { %p2684_p11 = pneg %p2683_p3 }
  0x5f   : > { %p2689_p13 = pnand %p2687_p12, %p2684_p11 }
  0x61   : > { %2692 = shalt.err (!%p2689_p13)
}
  0x62   : > { %s2693_s17 = scalar_lea.vmem %s372_s27, 256  ;;  %p2701_p6 = scmp.lt.s32.totalorder %s372_s27, %s372_s27 }
  0x63   : > { %p2694_p0 = scmp.ne.s32.totalorder %s372_s27, %s2693_s17  ;;  %p2702_p8 = scmp.lt.s32.totalorder %s2693_s17, %s2693_s17 }
  0x65   : > { %p2696_p1 = pnand %p2694_p0, %p2990_p7  ;;  %p2703_p9 = por %p2702_p8, %p2701_p6 }
  0x67   : > { %p2697_p4 = pneg %p2696_p1 }
  0x69   : > { %p2704_p10 = pnand %p2703_p9, %p2697_p4 }
  0x6b   : > { %2707 = shalt.err (!%p2704_p10)
}
  0x6c   : > { %2483 = dma.hbm_to_vmem [thread:$0]  (!%p2976_p5), %s3429_s1, 256, %s372_s27, [#allocation5], %s3459_s29, %s3459_s29, %s3458_s23  }
  0x6d   : > { %s2856_s2 = smov [#allocation8]   ;;  %s2857_s13 = smov [#allocation11]  }
  0x6e   : > { %s397_s24 = sshll.u32 %s2856_s2, 4  ;;  %s423_s14 = sshll.u32 %s2857_s13, 4  ;;  %s398_s24 = int_to_ptr.vmem [resolvable:$true] %s397_s24  ;;  %s424_s14 = int_to_ptr.vmem [resolvable:$true] %s423_s14 }
  0x6f   : > { %s2708_s16 = scalar_lea.hbm %s3431_s3, 3840 }
  0x70   : > { %p2709_p2 = scmp.ne.s32.totalorder %s3431_s3, %s2708_s16  ;;  %p2715_p12 = scmp.lt.u32.totalorder %s2708_s16, %s3431_s3 }
  0x72   : > { %p2711_p3 = pnand %p2709_p2, %p2990_p7 }
  0x74   : > { %p2712_p11 = pneg %p2711_p3 }
  0x76   : > { %p2717_p13 = pnand %p2715_p12, %p2712_p11 }
  0x78   : > { %2720 = shalt.err (!%p2717_p13)
}
  0x79   : > { %s2721_s27 = scalar_lea.vmem %s398_s24, 3840  ;;  %p2729_p6 = scmp.lt.s32.totalorder %s398_s24, %s398_s24 }
  0x7a   : > { %p2722_p0 = scmp.ne.s32.totalorder %s398_s24, %s2721_s27  ;;  %p2730_p8 = scmp.lt.s32.totalorder %s2721_s27, %s2721_s27 }
  0x7c   : > { %p2724_p1 = pnand %p2722_p0, %p2990_p7  ;;  %p2731_p9 = por %p2730_p8, %p2729_p6 }
  0x7e   : > { %p2725_p4 = pneg %p2724_p1 }
  0x80   : > { %p2732_p10 = pnand %p2731_p9, %p2725_p4 }
  0x82   : > { %2735 = shalt.err (!%p2732_p10)
}
  0x83   : > { %2489 = dma.hbm_to_vmem [thread:$0]  (!%p2976_p5), %s3431_s3, 3840, %s398_s24, [#allocation7], %s3459_s29, %s3459_s29, %s3458_s23  }
  0x84   : > { %s2736_s26 = scalar_lea.hbm %s3433_s5, 512 }
  0x85   : > { %p2737_p2 = scmp.ne.s32.totalorder %s3433_s5, %s2736_s26  ;;  %p2743_p12 = scmp.lt.u32.totalorder %s2736_s26, %s3433_s5 }
  0x87   : > { %p2739_p3 = pnand %p2737_p2, %p2990_p7 }
  0x89   : > { %p2740_p11 = pneg %p2739_p3 }
  0x8b   : > { %p2745_p13 = pnand %p2743_p12, %p2740_p11 }
  0x8d   : > { %2748 = shalt.err (!%p2745_p13)
}
  0x8e   : > { %s2749_s22 = scalar_lea.vmem %s424_s14, 512  ;;  %p2757_p6 = scmp.lt.s32.totalorder %s424_s14, %s424_s14 }
  0x8f   : > { %p2750_p0 = scmp.ne.s32.totalorder %s424_s14, %s2749_s22  ;;  %p2758_p8 = scmp.lt.s32.totalorder %s2749_s22, %s2749_s22 }
  0x91   : > { %p2752_p1 = pnand %p2750_p0, %p2990_p7  ;;  %p2759_p9 = por %p2758_p8, %p2757_p6 }
  0x93   : > { %p2753_p4 = pneg %p2752_p1 }
  0x95   : > { %p2760_p10 = pnand %p2759_p9, %p2753_p4 }
  0x97   : > { %2763 = shalt.err (!%p2760_p10)
}
  0x98   : > { %2495 = dma.hbm_to_vmem [thread:$0]  (!%p2976_p5), %s3433_s5, 512, %s424_s14, [#allocation10], %s3459_s29, %s3459_s29, %s3458_s23  }
  0x99   : > { %s2858_s19 = smov [#allocation14]   ;;  %s2859_s13 = smov [#allocation15]  }
  0x9a   : > { %s449_s2 = sshll.u32 %s2858_s19, 4  ;;  %s471_s25 = sshll.u32 %s2859_s13, 4  ;;  %s450_s2 = int_to_ptr.vmem [resolvable:$true] %s449_s2  ;;  %s472_s25 = int_to_ptr.vmem [resolvable:$true] %s471_s25 }
  0x9b   : > { %s2764_s18 = scalar_lea.hbm %s3435_s7, 1024 }
  0x9c   : > { %p2765_p2 = scmp.ne.s32.totalorder %s3435_s7, %s2764_s18  ;;  %p2771_p12 = scmp.lt.u32.totalorder %s2764_s18, %s3435_s7 }
  0x9e   : > { %p2767_p3 = pnand %p2765_p2, %p2990_p7 }
  0xa0   : > { %p2768_p11 = pneg %p2767_p3 }
  0xa2   : > { %p2773_p13 = pnand %p2771_p12, %p2768_p11 }
  0xa4   : > { %2776 = shalt.err (!%p2773_p13)
}
  0xa5   : > { %s2777_s14 = scalar_lea.vmem %s450_s2, 1024  ;;  %p2785_p6 = scmp.lt.s32.totalorder %s450_s2, %s450_s2 }
  0xa6   : > { %p2778_p0 = scmp.ne.s32.totalorder %s450_s2, %s2777_s14  ;;  %p2786_p8 = scmp.lt.s32.totalorder %s2777_s14, %s2777_s14 }
  0xa8   : > { %p2780_p1 = pnand %p2778_p0, %p2990_p7  ;;  %p2787_p9 = por %p2786_p8, %p2785_p6 }
  0xaa   : > { %p2781_p4 = pneg %p2780_p1 }
  0xac   : > { %p2788_p10 = pnand %p2787_p9, %p2781_p4 }
  0xae   : > { %2791 = shalt.err (!%p2788_p10)
}
  0xaf   : > { %2501 = dma.hbm_to_vmem [thread:$0]  (!%p2976_p5), %s3435_s7, 1024, %s450_s2, [#allocation13], %s3459_s29, %s3459_s29, %s3458_s23  }
  0xb0   : > { %s2792_s16 = scalar_lea.hbm %s3439_s11, 512 }
  0xb1   : > { %p2793_p2 = scmp.ne.s32.totalorder %s3439_s11, %s2792_s16  ;;  %p2799_p12 = scmp.lt.u32.totalorder %s2792_s16, %s3439_s11 }
  0xb3   : > { %p2795_p3 = pnand %p2793_p2, %p2990_p7 }
  0xb5   : > { %p2796_p11 = pneg %p2795_p3 }
  0xb7   : > { %p2801_p13 = pnand %p2799_p12, %p2796_p11 }
  0xb9   : > { %2804 = shalt.err (!%p2801_p13)
}
  0xba   : > { %s2805_s24 = scalar_lea.vmem %s472_s25, 512  ;;  %p2813_p6 = scmp.lt.s32.totalorder %s472_s25, %s472_s25 }
  0xbb   : > { %p2806_p0 = scmp.ne.s32.totalorder %s472_s25, %s2805_s24  ;;  %p2814_p8 = scmp.lt.s32.totalorder %s2805_s24, %s2805_s24 }
  0xbd   : > { %p2808_p1 = pnand %p2806_p0, %p2990_p7  ;;  %p2815_p9 = por %p2814_p8, %p2813_p6 }
  0xbf   : > { %p2809_p4 = pneg %p2808_p1 }
  0xc1   : > { %p2816_p10 = pnand %p2815_p9, %p2809_p4 }
  0xc3   : > { %2819 = shalt.err (!%p2816_p10)
}
  0xc4   : > { %2504 = dma.hbm_to_vmem [thread:$0]  (!%p2976_p5), %s3439_s11, 512, %s472_s25, [#allocation16], %s3459_s29, %s3459_s29, %s3458_s23  }
  0xc5   : > { %p3460_p2 = scmp.ne.s32.totalorder %s3454_s15, 0 }
  0xc6   : > { %p3461_p7 = scmp.eq.s32.totalorder (!%p3460_p2), %s2959_s30, 0 }
  0xc7   : > { %501 = sbr.rel (%p3460_p2) target bundleno = 2943 (0xb7f), region = 76 }
  0xce   : > { %2825 = dma.done.wait (%p3461_p7), [#allocation5], 256   ;;  %p3462_p3 = pmov %p3461_p7 }
  0xd0   : > { %2827 = vsyncadd (%p3462_p3), [#allocation5], 4294967040  ;;  %p3463_p11 = pmov %p3462_p3 }
  0xd1   : > { %p3464_p12 = pmov %p3462_p3 }
  0xd2   : > { %2829 = dma.done.wait (%p3463_p11), [#allocation7], 4096  }
  0xd3   : > { %2831 = vsyncadd (%p3464_p12), [#allocation7], 4294963200  ;;  %p3465_p13 = pmov %p3462_p3 }
  0xd4   : > { %p3466_p5 = pmov %p3462_p3 }
  0xd5   : > { %2833 = dma.done.wait (%p3465_p13), [#allocation10], 1536  }
  0xd6   : > { %2835 = vsyncadd (%p3466_p5), [#allocation10], 4294965760  ;;  %p3467_p0 = pmov %p3462_p3 }
  0xd8   : > { %2837 = dma.done.wait (%p3467_p0), [#allocation13], 1792   ;;  %p3468_p1 = pmov %p3467_p0 }
  0xd9   : > { %p3469_p4 = pmov %p3467_p0 }
  0xda   : > { %2839 = vsyncadd (%p3468_p1), [#allocation13], 4294965504 }
  0xdb   : > { %2841 = dma.done.wait (%p3469_p4), [#allocation16], 512   ;;  %p3470_p6 = pmov %p3467_p0 }
  0xdc   : > { %p574_p8 = scmp.lt.s32.totalorder %s2959_s30, 1  ;;  %s2860_s29 = smov 126   ;;  %v2867_v4 = vmov 0.0   ;;  %vm631_vm0 = vcmask 1039360   ;;  %vm657_vm1 = vcmask 916480   ;;  %vm644_vm2 = vcmask 1031168  }
  0xdd   : > { %2843 = vsyncadd (%p3470_p6), [#allocation16], 4294966784  ;;  %s2861_s25 = smov 127   ;;  %s2862_s27 = smov 112   ;;  %818 = vmatprep.mubr.f32.mxu0 %v2867_v4  ;;  %vm683_vm3 = vcmask 900096   ;;  %vm670_vm4 = vcmask 908288  }
  0xde   : > { %s3475_s30 = smov (!%p574_p8, %s2959_s30), 1  ;;  %s2863_s19 = smov 110   ;;  %vm709_vm5 = vcmask 777216   ;;  %vm696_vm6 = vcmask 785408   ;;  %vm722_vm7 = vcmask 769024   ;;  %v586_v59 = vld [vmem:[#allocation4] sm:$0xff] }
  0xdf   : > { %s2447_s15 = smul.u32 24, %s3475_s30  ;;  %s2864_s13 = smov 111   ;;  %vm747_vm8 = vcmask 588800   ;;  %v587_v61 = vld [vmem:[#allocation4 + $0x8] sm:$0xff]  ;;  %v590_v62 = vld [vmem:[#allocation8] sm:$0xff]  ;;  %vm891_vm9 = vcmask 1046528  }
  0xe0   : > { %s2865_s26 = smov 95   ;;  %s2866_s16 = smov 96   ;;  %v591_v63 = vld [vmem:[#allocation8 + $0x8] sm:$0xff]  ;;  %vm2870_vm10 = vmmov 1   ;;  %vm995_vm13 = vcmask 400384   ;;  %vm1082_vm14 = vcmask 130048  }
  0xe1   : > { %s578_s23 = scalar_lea.vmem %s3428_s0, %s2447_s15  ;;  %s2868_s18 = smov 94   ;;  %vm2358_vm11 = vmpackc.low %vm891_vm9, %vm2870_vm10  ;;  %vm1253_vm15 = vcmask 1040384  }
  0xe2   : > { %v584_v0 = vld [vmem:[%s578_s23 + $0x8] sm:$0xff]  ;;  %v585_v1 = vld [vmem:[%s578_s23 + $0x10] sm:$0xff]  ;;  %v583_v3 = vld [vmem:[%s578_s23] sm:$0xff]  ;;  %s2872_s21 = smov 121   ;;  %s2873_s17 = smov 120  }
  0xe3   : > { %v2564_v2 = vpack.i.bf16 %v585_v1, %v584_v0  ;;  %s2874_s22 = smov 119   ;;  %s2875_s24 = smov 114  }
  0xe4   : > { %s2876_s2 = smov 113   ;;  %s3471_s23 = sld [smem:[#allocation24_spill]] }
  0xe5   : > { %2565 = vrot.lane.b32.xlu1 %v2564_v2, %s2860_s29  ;;  %2560 = vrot.lane.b32.xlu0 %v2564_v2, %s2861_s25 }
  0xe9   : > { %2570 = vrot.lane.b32.xlu1 %v2564_v2, %s2862_s27  ;;  %625 = vrot.lane.b32.xlu0 %v583_v3, %s2861_s25 }
  0xed   : > { %651 = vrot.lane.b32.xlu1 %v583_v3, %s2862_s27  ;;  %638 = vrot.lane.b32.xlu0 %v583_v3, %s2860_s29 }
  0xf1   : > { %2580 = vrot.lane.b32.xlu1 %v2564_v2, %s2863_s19  ;;  %2575 = vrot.lane.b32.xlu0 %v2564_v2, %s2864_s13 }
  0xf5   : > { %677 = vrot.lane.b32.xlu1 %v583_v3, %s2863_s19  ;;  %664 = vrot.lane.b32.xlu0 %v583_v3, %s2864_s13  ;;  %s3472_s19 = sld [smem:[#allocation25_spill]] }
  0xf9   : > { %2590 = vrot.lane.b32.xlu1 %v2564_v2, %s2865_s26  ;;  %2585 = vrot.lane.b32.xlu0 %v2564_v2, %s2866_s16  ;;  %v2315_v2 = vpack.c.bf16 %v591_v63, %v590_v62 }
  0xfd   : > { %703 = vrot.lane.b32.xlu1 %v583_v3, %s2865_s26  ;;  %690 = vrot.lane.b32.xlu0 %v583_v3, %s2866_s16 }
 0x101   : > { %720 = vrot.lane.b32.xlu1 %v585_v1, %s2868_s18  ;;  %718 = vrot.lane.b32.xlu0 %v584_v0, %s2868_s18  ;;  %v2869_v1 = vmov 0.0|0.0  }
 0x102   : > { %2314 = vmatprep.subr.bf16.mxu1 %v2869_v1 }
 0x103   : > { %2316 = vmatpush1.bf16.msra.mxu1 %v2315_v2 }
 0x104   : > { %2317 = vmatprep.subr.bf16.mxu1 %v2869_v1 }
 0x105   : > { %716 = vrot.lane.b32.xlu0 %v583_v3, %s2868_s18 }
 0x157   : > { %v2566_v5 = vpop.permute.xlu1 %2565  ;;  %v2561_v6 = vpop.permute.xlu0 %2560 }
 0x158   : > { %v2563_v7 = vunpack.i.h.bf16 %v2561_v6  ;;  %v2562_v8 = vunpack.i.l.bf16 %v2561_v6  ;;  %v2568_v9 = vunpack.i.h.bf16 %v2566_v5  ;;  %v2567_v10 = vunpack.i.l.bf16 %v2566_v5 }
 0x15a   : > { %v633_v11 = vsel %vm631_vm0, %v2562_v8, %v2563_v7  ;;  %v646_v19 = vsel %vm644_vm2, %v2567_v10, %v2568_v9  ;;  %v594_v7 = vld [vmem:[#allocation8 + $0x20] sm:$0xff] }
 0x15b   : > { %v2571_v12 = vpop.permute.xlu1 %2570  ;;  %v626_v13 = vpop.permute.xlu0 %625  ;;  %v2298_v14 = vpack.c.bf16 %v633_v11, %v584_v0  ;;  %v592_v0 = vld [vmem:[#allocation8 + $0x10] sm:$0xff] }
 0x15c   : > { %v2573_v15 = vunpack.i.h.bf16 %v2571_v12  ;;  %v2572_v16 = vunpack.i.l.bf16 %v2571_v12  ;;  %v632_v17 = vsel %vm631_vm0, %v626_v13, %v2562_v8  ;;  %v595_v8 = vld [vmem:[#allocation8 + $0x28] sm:$0xff]  ;;  %v596_v12 = vld [vmem:[#allocation8 + $0x30] sm:$0xff]  ;;  %v597_v13 = vld [vmem:[#allocation8 + $0x38] sm:$0xff] }
 0x15d   : > { %2299 = vmatprep.subr.bf16.mxu0 %v2298_v14  ;;  %v2300_v18 = vpack.c.bf16 %v632_v17, %v583_v3  ;;  %v593_v3 = vld [vmem:[#allocation8 + $0x18] sm:$0xff]  ;;  %v599_v17 = vld [vmem:[#allocation8 + $0x48] sm:$0xff] }
 0x15e   : > { %v659_v20 = vsel %vm657_vm1, %v2572_v16, %v2573_v15  ;;  %v2318_v5 = vpack.c.bf16 %v593_v3, %v592_v0  ;;  %v2324_v15 = vpack.c.bf16 %v597_v13, %v596_v12 }
 0x15f   : > { %v652_v21 = vpop.permute.xlu1 %651  ;;  %2301 = vmatpush1.bf16.msra.mxu0 %v2300_v18  ;;  %v639_v22 = vpop.permute.xlu0 %638  ;;  %v2302_v23 = vpack.c.bf16 %v659_v20, %v646_v19  ;;  %v600_v19 = vld [vmem:[#allocation8 + $0x50] sm:$0xff]  ;;  %v601_v20 = vld [vmem:[#allocation8 + $0x58] sm:$0xff] }
 0x160   : > { %v658_v24 = vsel %vm657_vm1, %v652_v21, %v2572_v16  ;;  %v645_v25 = vsel %vm644_vm2, %v639_v22, %v2567_v10  ;;  %2319 = vmatpush1.bf16.msra.mxu1 %v2318_v5  ;;  %v2321_v10 = vpack.c.bf16 %v595_v8, %v594_v7  ;;  %v598_v16 = vld [vmem:[#allocation8 + $0x40] sm:$0xff]  ;;  %v2330_v21 = vpack.c.bf16 %v601_v20, %v600_v19 }
 0x161   : > { %v2304_v26 = vpack.c.bf16 %v658_v24, %v645_v25  ;;  %2303 = vmatprep.subr.bf16.mxu0 %v2302_v23  ;;  %2320 = vmatprep.subr.bf16.mxu1 %v2869_v1  ;;  %v2327_v18 = vpack.c.bf16 %v599_v17, %v598_v16  ;;  %v602_v22 = vld [vmem:[#allocation8 + $0x60] sm:$0xff]  ;;  %v603_v23 = vld [vmem:[#allocation8 + $0x68] sm:$0xff]  ;;  %v604_v25 = vld [vmem:[#allocation8 + $0x70] sm:$0xff]  ;;  %vm1402_vm2 = vcmask 261120  }
 0x162   : > { %v2333_v24 = vpack.c.bf16 %v603_v23, %v602_v22 }
 0x163   : > { %v2581_v27 = vpop.permute.xlu1 %2580  ;;  %2305 = vmatpush1.bf16.msra.mxu0 %v2304_v26  ;;  %v2576_v28 = vpop.permute.xlu0 %2575  ;;  %v605_v26 = vld [vmem:[#allocation8 + $0x78] sm:$0xff] }
 0x164   : > { %v2583_v29 = vunpack.i.h.bf16 %v2581_v27  ;;  %v2582_v30 = vunpack.i.l.bf16 %v2581_v27  ;;  %v2578_v31 = vunpack.i.h.bf16 %v2576_v28  ;;  %v2577_v32 = vunpack.i.l.bf16 %v2576_v28  ;;  %2322 = vmatpush1.bf16.msra.mxu1 %v2321_v10  ;;  %v606_v28 = vld [vmem:[#allocation8 + $0x80] sm:$0xff] }
 0x165   : > { %2323 = vmatprep.subr.bf16.mxu1 %v2869_v1  ;;  %v2336_v27 = vpack.c.bf16 %v605_v26, %v604_v25  ;;  %v972_v10 = vlaneseq }
 0x166   : > { %v672_v33 = vsel %vm670_vm4, %v2577_v32, %v2578_v31  ;;  %v685_v34 = vsel %vm683_vm3, %v2582_v30, %v2583_v29  ;;  %v607_v29 = vld [vmem:[#allocation8 + $0x88] sm:$0xff]  ;;  %v608_v31 = vld [vmem:[#allocation8 + $0x90] sm:$0xff] }
 0x167   : > { %v678_v35 = vpop.permute.xlu1 %677  ;;  %v665_v36 = vpop.permute.xlu0 %664  ;;  %v2306_v37 = vpack.c.bf16 %v685_v34, %v672_v33  ;;  %v610_v34 = vld [vmem:[#allocation8 + $0xa0] sm:$0xff]  ;;  %v973_v12 = vand.u32 127, %v972_v10  ;;  %v981_v10 = vld [vmem:[#allocation9 + $0x20] sm:$0xff] }
 0x168   : > { %v684_v38 = vsel %vm683_vm3, %v678_v35, %v2582_v30  ;;  %v671_v39 = vsel %vm670_vm4, %v665_v36, %v2577_v32  ;;  %2325 = vmatpush1.bf16.msra.mxu1 %v2324_v15  ;;  %v2339_v30 = vpack.c.bf16 %v607_v29, %v606_v28  ;;  %v609_v32 = vld [vmem:[#allocation8 + $0x98] sm:$0xff]  ;;  %v611_v35 = vld [vmem:[#allocation8 + $0xa8] sm:$0xff]  ;;  %vm1596_vm3 = vcmask 523264  }
 0x169   : > { %v2308_v40 = vpack.c.bf16 %v684_v38, %v671_v39  ;;  %2307 = vmatprep.subr.bf16.mxu0 %v2306_v37  ;;  %2326 = vmatprep.subr.bf16.mxu1 %v2869_v1  ;;  %v2342_v33 = vpack.c.bf16 %v609_v32, %v608_v31  ;;  %v2345_v36 = vpack.c.bf16 %v611_v35, %v610_v34  ;;  %v612_v37 = vld [vmem:[#allocation8 + $0xb0] sm:$0xff]  ;;  %v613_v38 = vld [vmem:[#allocation8 + $0xb8] sm:$0xff]  ;;  %vm974_vm12 = vcmp.lt.s32.totalorder %v973_v12, 49  ;;  %v983_v12 = vld [vmem:[#allocation9 + $0x30] sm:$0xff] }
 0x16a   : > { %v2348_v39 = vpack.c.bf16 %v613_v38, %v612_v37 }
 0x16b   : > { %v2591_v41 = vpop.permute.xlu1 %2590  ;;  %v2586_v42 = vpop.permute.xlu0 %2585  ;;  %2309 = vmatpush1.bf16.msra.mxu0 %v2308_v40  ;;  %v614_v40 = vld [vmem:[#allocation8 + $0xc0] sm:$0xff] }
 0x16c   : > { %v2593_v43 = vunpack.i.h.bf16 %v2591_v41  ;;  %v2592_v44 = vunpack.i.l.bf16 %v2591_v41  ;;  %v2588_v45 = vunpack.i.h.bf16 %v2586_v42  ;;  %v2587_v46 = vunpack.i.l.bf16 %v2586_v42  ;;  %2328 = vmatpush1.bf16.msra.mxu1 %v2327_v18  ;;  %v615_v41 = vld [vmem:[#allocation8 + $0xc8] sm:$0xff] }
 0x16d   : > { %2329 = vmatprep.subr.bf16.mxu1 %v2869_v1  ;;  %v2351_v42 = vpack.c.bf16 %v615_v41, %v614_v40 }
 0x16e   : > { %v698_v47 = vsel %vm696_vm6, %v2587_v46, %v2588_v45  ;;  %v711_v48 = vsel %vm709_vm5, %v2592_v44, %v2593_v43  ;;  %v616_v43 = vld [vmem:[#allocation8 + $0xd0] sm:$0xff] }
 0x16f   : > { %v704_v49 = vpop.permute.xlu1 %703  ;;  %v691_v50 = vpop.permute.xlu0 %690  ;;  %v2310_v51 = vpack.c.bf16 %v711_v48, %v698_v47  ;;  %v619_v47 = vld [vmem:[#allocation8 + $0xe8] sm:$0x7f] }
 0x170   : > { %v710_v52 = vsel %vm709_vm5, %v704_v49, %v2592_v44  ;;  %v697_v53 = vsel %vm696_vm6, %v691_v50, %v2587_v46  ;;  %2331 = vmatpush1.bf16.msra.mxu1 %v2330_v21  ;;  %v617_v44 = vld [vmem:[#allocation8 + $0xd8] sm:$0xff]  ;;  %v618_v46 = vld [vmem:[#allocation8 + $0xe0] sm:$0xff]  ;;  %v2871_v50 = vmov 0   ;;  %vm2877_vm5 = vmmov 0  }
 0x171   : > { %v2312_v54 = vpack.c.bf16 %v710_v52, %v697_v53  ;;  %2311 = vmatprep.subr.bf16.mxu0 %v2310_v51  ;;  %2332 = vmatprep.subr.bf16.mxu1 %v2869_v1  ;;  %v2354_v45 = vpack.c.bf16 %v617_v44, %v616_v43  ;;  %v2357_v48 = vpack.c.bf16 %v619_v47, %v618_v46  ;;  %vm1950_vm6 = vcmask 1024  }
 0x172   : > { %2594 = vset.pattern.permute.xlu1 %v2871_v50  ;;  %2595 = vset.pattern.permute.xlu0 %v2871_v50 }
 0x173   : > { %v721_v55 = vpop.permute.xlu1 %720  ;;  %v719_v56 = vpop.permute.xlu0 %718  ;;  %2313 = vmatpush1.bf16.msra.mxu0 %v2312_v54 }
 0x174   : > { %v724_v57 = vsel %vm722_vm7, %v719_v56, %v721_v55  ;;  %2334 = vmatpush1.bf16.msra.mxu1 %v2333_v24 }
 0x175   : > { %770 = vmatprep.subr.mxu0 %v724_v57  ;;  %2335 = vmatprep.subr.bf16.mxu1 %v2869_v1 }
 0x177   : > { %v717_v58 = vpop.permute.xlu0 %716 }
 0x178   : > { %v723_v60 = vsel %vm722_vm7, %v717_v58, %v719_v56  ;;  %2337 = vmatpush1.bf16.msra.mxu1 %v2336_v27  ;;  %v978_v27 = vld [vmem:[#allocation9 + $0x8] sm:$0xff] }
 0x179   : > { %771 = vmatpush1.msra.mxu0 %v723_v60  ;;  %2338 = vmatprep.subr.bf16.mxu1 %v2869_v1  ;;  %v589_v60 = vld [vmem:[#allocation6 + $0x8] sm:$0xff] }
 0x17a   : > { %2107 = vmatmul.mubr.msk.f32.vlgmr.msra.gmra.mrb[0].mxu0 %vm747_vm8, %v586_v59  ;;  %2360 = vmatprep.subr.bf16.mxu0 %v2869_v1 }
 0x17b   : > { %824 = vmatprep.mubr.f32.mxu0 %v2867_v4 }
 0x17c   : > { %2340 = vmatpush1.bf16.msra.mxu1 %v2339_v30 }
 0x17d   : > { %2341 = vmatprep.subr.bf16.mxu1 %v2869_v1 }
 0x17e   : > { %2108 = vmatmul.mubr.msk.f32.gmra.mrb[2].mxu0 %vm747_vm8, %v587_v61  ;;  %v588_v61 = vld [vmem:[#allocation6] sm:$0xff] }
 0x17f   : > { %2112 = vmatprep.mubr.msk.f32.mxu0 %vm1082_vm14, %v978_v27  ;;  %v993_v27 = vld [vmem:[#allocation12 + $0x20] sm:$0xff] }
 0x180   : > { %2343 = vmatpush1.bf16.msra.mxu1 %v2342_v33 }
 0x181   : > { %2344 = vmatprep.subr.bf16.mxu1 %v2869_v1 }
 0x184   : > { %2346 = vmatpush1.bf16.msra.mxu1 %v2345_v36 }
 0x185   : > { %2347 = vmatprep.subr.bf16.mxu1 %v2869_v1 }
 0x188   : > { %2349 = vmatpush1.bf16.msra.mxu1 %v2348_v39 }
 0x189   : > { %2350 = vmatprep.subr.bf16.mxu1 %v2869_v1 }
 0x18c   : > { %2352 = vmatpush1.bf16.msra.mxu1 %v2351_v42 }
 0x18d   : > { %2353 = vmatprep.subr.bf16.mxu1 %v2869_v1 }
 0x190   : > { %2355 = vmatpush1.bf16.msra.mxu1 %v2354_v45 }
 0x191   : > { %2356 = vmatprep.subr.bf16.mxu1 %v2869_v1 }
 0x194   : > { %2359 = vmatpush1.bf16.msk.msra.mxu1 %vm2358_vm11, %v2357_v48 }
 0x24d   : > { %v3210_v6 = vpop.f32.mrb[0].mxu0 }
 0x24e   : > { %835 = vrot.lane.b32.xlu1 %v3210_v6, %s2861_s25  ;;  %v3215_v9 = vpop.f32.mrb[1].mxu0 }
 0x24f   : > { %837 = vrot.lane.b32.xlu0 %v3215_v9, %s2861_s25 }
 0x251   : > { %v3219_v11 = vpop.f32.mrb[2].mxu0 }
 0x252   : > { %839 = vrot.lane.b32.xlu1 %v3219_v11, %s2861_s25  ;;  %v3224_v14 = vpop.f32.mrb[3].mxu0 }
 0x253   : > { %841 = vrot.lane.b32.xlu0 %v3224_v14, %s2861_s25 }
 0x2c0   : > { %v836_v49 = vpop.permute.xlu1 %835 }
 0x2c1   : > { %v838_v51 = vpop.permute.xlu0 %837 }
 0x2c2   : > { %v843_v52 = vsel %vm631_vm0, %v836_v49, %v838_v51  ;;  %v850_v53 = vmax.f32 %v3215_v9, %v838_v51 }
 0x2c3   : > { %v849_v54 = vmax.f32 %v3210_v6, %v843_v52 }
 0x2c4   : > { %v840_v55 = vpop.permute.xlu1 %839  ;;  %859 = vrot.lane.b32.xlu0 %v850_v53, %s2862_s27 }
 0x2c5   : > { %857 = vrot.lane.b32.xlu1 %v849_v54, %s2862_s27  ;;  %v842_v56 = vpop.permute.xlu0 %841 }
 0x2c6   : > { %v844_v57 = vsel %vm631_vm0, %v840_v55, %v842_v56  ;;  %v852_v58 = vmax.f32 %v3224_v14, %v842_v56  ;;  %vm2396_vm0 = vmpackc.low %vm1253_vm15, %vm2870_vm10 }
 0x2c7   : > { %v851_v59 = vmax.f32 %v3219_v11, %v844_v57 }
 0x2c8   : > { %863 = vrot.lane.b32.xlu0 %v852_v58, %s2862_s27 }
 0x2c9   : > { %861 = vrot.lane.b32.xlu1 %v851_v59, %s2862_s27 }
 0x2cc   : > { %882 = vperm.xlu0 %2595, %v589_v60  }
 0x2cd   : > { %877 = vperm.xlu1 %2594, %v588_v61  }
 0x336   : > { %v860_v62 = vpop.permute.xlu0 %859 }
 0x337   : > { %v858_v63 = vpop.permute.xlu1 %857  ;;  %v872_v0 = vmax.f32 %v850_v53, %v860_v62 }
 0x338   : > { %v865_v2 = vsel %vm657_vm1, %v858_v63, %v860_v62 }
 0x339   : > { %v871_v3 = vmax.f32 %v849_v54, %v865_v2  ;;  %2110 = vmatprep.mubr.msk.f32.mxu1 %vm670_vm4, %v872_v0 }
 0x33a   : > { %v864_v5 = vpop.permute.xlu0 %863 }
 0x33b   : > { %v874_v6 = vmax.f32 %v852_v58, %v864_v5  ;;  %v862_v7 = vpop.permute.xlu1 %861  ;;  %960 = vmatmul.mubr.f32.vlgmr.msra.gmra.mrb[0].mxu1 %v871_v3 }
 0x33c   : > { %v866_v8 = vsel %vm657_vm1, %v862_v7, %v864_v5  ;;  %v980_v7 = vld [vmem:[#allocation9 + $0x18] sm:$0xff]  ;;  %vm1240_vm1 = vcmask 334848  }
 0x33d   : > { %v873_v9 = vmax.f32 %v851_v59, %v866_v8  ;;  %2111 = vmatprep.mubr.msk.f32.mxu1 %vm670_vm4, %v874_v6  ;;  %v977_v6 = vld [vmem:[#allocation9] sm:$0xff]  ;;  %v979_v8 = vld [vmem:[#allocation9 + $0x10] sm:$0xff]  ;;  %vm1743_vm4 = vcmask 31744  }
 0x33f   : > { %965 = vmatmul.mubr.f32.gmra.mrb[2].mxu1 %v873_v9  ;;  %v982_v9 = vld [vmem:[#allocation9 + $0x28] sm:$0xff] }
 0x34b   : > { %v883_v16 = vpop.permute.xlu0 %882 }
 0x34c   : > { %v878_v11 = vpop.permute.xlu1 %877 }
 0x40e   : > { %v961_v13 = vpop.f32.mrb[0].mxu1 }
 0x40f   : > { %v962_v14 = vadd.f32 %v961_v13, %v878_v11  ;;  %v963_v15 = vpop.f32.mrb[1].mxu1  ;;  %v984_v11 = vld [vmem:[#allocation9 + $0x38] sm:$0xff] }
 0x411   : > { %v970_v17 = vmax.f32 %v962_v14, 0.0 }
 0x412   : > { %v966_v18 = vpop.f32.mrb[2].mxu1 }
 0x413   : > { %v975_v19 = vsel %vm974_vm12, %v970_v17, 0.0  ;;  %v967_v20 = vadd.f32 %v966_v18, %v883_v16  ;;  %v968_v21 = vpop.f32.mrb[3].mxu1 }
 0x414   : > { %996 = vst.msk [vmem:[#allocation3] sm:$0xff] %vm995_vm13, %v975_v19  ;;  %1008 = vrot.lane.b32.xlu0 %v975_v19, %s2860_s29  ;;  %1000 = vrot.lane.b32.xlu1 %v975_v19, %s2861_s25  ;;  %v989_v21 = vld [vmem:[#allocation12] sm:$0xff] }
 0x415   : > { %v971_v22 = vmax.f32 %v967_v20, 0.0 }
 0x417   : > { %v976_v23 = vsel %vm974_vm12, %v971_v22, 0.0  ;;  %v990_v22 = vld [vmem:[#allocation12 + $0x8] sm:$0xff] }
 0x418   : > { %997 = vst.msk [vmem:[#allocation3 + $0x8] sm:$0xff] %vm995_vm13, %v976_v23  ;;  %1016 = vrot.lane.b32.xlu0 %v975_v19, %s2872_s21  ;;  %1002 = vrot.lane.b32.xlu1 %v976_v23, %s2861_s25 }
 0x41b   : > { %v1064_v24 = vld [vmem:[#allocation3] sm:$0xff] }
 0x41c   : > { %1024 = vrot.lane.b32.xlu0 %v975_v19, %s2873_s17  ;;  %1010 = vrot.lane.b32.xlu1 %v976_v23, %s2860_s29  ;;  %s2106_s29 = sshll.u32 %s3475_s30, 1 }
 0x41d   : > { %s582_s13 = scalar_lea.vmem %s3472_s19, %s2106_s29 }
 0x41f   : > { %v1065_v25 = vld [vmem:[#allocation3 + $0x8] sm:$0xff] }
 0x420   : > { %1032 = vrot.lane.b32.xlu0 %v975_v19, %s2874_s22  ;;  %1018 = vrot.lane.b32.xlu1 %v976_v23, %s2872_s21  ;;  %v2361_v26 = vpack.c.bf16 %v1065_v25, %v1064_v24  ;;  %v2387_v24 = vpack.c.bf16 %v990_v22, %v989_v21  ;;  %v992_v25 = vld [vmem:[#allocation12 + $0x18] sm:$0xff] }
 0x422   : > { %2362 = vmatpush1.bf16.msra.mxu0 %v2361_v26 }
 0x423   : > { %2363 = vmatprep.subr.bf16.mxu0 %v2869_v1 }
 0x424   : > { %1040 = vrot.lane.b32.xlu0 %v975_v19, %s2875_s24  ;;  %1026 = vrot.lane.b32.xlu1 %v976_v23, %s2873_s17 }
 0x428   : > { %1048 = vrot.lane.b32.xlu0 %v975_v19, %s2876_s2  ;;  %1034 = vrot.lane.b32.xlu1 %v976_v23, %s2874_s22 }
 0x42c   : > { %1056 = vrot.lane.b32.xlu0 %v975_v19, %s2862_s27  ;;  %1042 = vrot.lane.b32.xlu1 %v976_v23, %s2875_s24 }
 0x430   : > { %1050 = vrot.lane.b32.xlu1 %v976_v23, %s2876_s2 }
 0x434   : > { %1058 = vrot.lane.b32.xlu1 %v976_v23, %s2862_s27  ;;  %v991_v23 = vld [vmem:[#allocation12 + $0x10] sm:$0xff] }
 0x435   : > { %v2391_v26 = vpack.c.bf16 %v992_v25, %v991_v23  ;;  %v1347_v23 = vld [vmem:[#allocation14 + $0x8] sm:$0xff]  ;;  %v1349_v25 = vld [vmem:[#allocation14 + $0x18] sm:$0xff] }
 0x486   : > { %v1001_v28 = vpop.permute.xlu1 %1000  ;;  %v1009_v29 = vpop.permute.xlu0 %1008 }
 0x487   : > { %1006 = vst.msk [vmem:[#allocation3 + $0x10] sm:$0xff] %vm995_vm13, %v1001_v28  ;;  %1014 = vst.msk [vmem:[#allocation3 + $0x20] sm:$0xff] %vm995_vm13, %v1009_v29  ;;  %v994_v28 = vld [vmem:[#allocation12 + $0x28] sm:$0x1] }
 0x488   : > { %v2395_v29 = vpack.c.bf16 %v994_v28, %v993_v27  ;;  %v1351_v27 = vld [vmem:[#allocation14 + $0x28] sm:$0xff]  ;;  %v1352_v28 = vld [vmem:[#allocation14 + $0x30] sm:$0xff] }
 0x48a   : > { %v1003_v30 = vpop.permute.xlu1 %1002  ;;  %v1017_v31 = vpop.permute.xlu0 %1016 }
 0x48b   : > { %1007 = vst.msk [vmem:[#allocation3 + $0x18] sm:$0xff] %vm995_vm13, %v1003_v30  ;;  %1022 = vst.msk [vmem:[#allocation3 + $0x30] sm:$0xff] %vm995_vm13, %v1017_v31 }
 0x48e   : > { %v1011_v32 = vpop.permute.xlu1 %1010  ;;  %v1025_v33 = vpop.permute.xlu0 %1024  ;;  %v1066_v36 = vld [vmem:[#allocation3 + $0x10] sm:$0xff]  ;;  %v1068_v41 = vld [vmem:[#allocation3 + $0x20] sm:$0xff] }
 0x48f   : > { %1015 = vst.msk [vmem:[#allocation3 + $0x28] sm:$0xff] %vm995_vm13, %v1011_v32  ;;  %1030 = vst.msk [vmem:[#allocation3 + $0x40] sm:$0xff] %vm995_vm13, %v1025_v33 }
 0x492   : > { %v1019_v34 = vpop.permute.xlu1 %1018  ;;  %v1033_v35 = vpop.permute.xlu0 %1032  ;;  %v1067_v37 = vld [vmem:[#allocation3 + $0x18] sm:$0xff]  ;;  %v1070_v46 = vld [vmem:[#allocation3 + $0x30] sm:$0xff] }
 0x493   : > { %1023 = vst.msk [vmem:[#allocation3 + $0x38] sm:$0xff] %vm995_vm13, %v1019_v34  ;;  %1038 = vst.msk [vmem:[#allocation3 + $0x50] sm:$0xff] %vm995_vm13, %v1033_v35  ;;  %v2364_v38 = vpack.c.bf16 %v1067_v37, %v1066_v36  ;;  %v985_v37 = vld [vmem:[#allocation11] sm:$0xff] }
 0x495   : > { %2365 = vmatpush1.bf16.msra.mxu0 %v2364_v38 }
 0x496   : > { %v1027_v39 = vpop.permute.xlu1 %1026  ;;  %v1041_v40 = vpop.permute.xlu0 %1040  ;;  %2366 = vmatprep.subr.bf16.mxu0 %v2869_v1  ;;  %v1069_v42 = vld [vmem:[#allocation3 + $0x28] sm:$0xff]  ;;  %v1072_v51 = vld [vmem:[#allocation3 + $0x40] sm:$0xff] }
 0x497   : > { %1031 = vst.msk [vmem:[#allocation3 + $0x48] sm:$0xff] %vm995_vm13, %v1027_v39  ;;  %1046 = vst.msk [vmem:[#allocation3 + $0x60] sm:$0xff] %vm995_vm13, %v1041_v40  ;;  %v2367_v43 = vpack.c.bf16 %v1069_v42, %v1068_v41  ;;  %v987_v39 = vld [vmem:[#allocation11 + $0x10] sm:$0xff]  ;;  %v986_v40 = vld [vmem:[#allocation11 + $0x8] sm:$0xff] }
 0x498   : > { %v1354_v41 = vld [vmem:[%s3436_s8] sm:$0xff]  ;;  %v988_v42 = vld [vmem:[#allocation11 + $0x18] sm:$0xff] }
 0x499   : > { %2368 = vmatpush1.bf16.msra.mxu0 %v2367_v43  ;;  %v1356_v43 = vld [vmem:[%s3436_s8 + $0x10] sm:$0xff] }
 0x49a   : > { %v1035_v44 = vpop.permute.xlu1 %1034  ;;  %v1049_v45 = vpop.permute.xlu0 %1048  ;;  %2369 = vmatprep.subr.bf16.mxu0 %v2869_v1  ;;  %v1071_v47 = vld [vmem:[#allocation3 + $0x38] sm:$0xff]  ;;  %v1074_v55 = vld [vmem:[#allocation3 + $0x50] sm:$0xff] }
 0x49b   : > { %1039 = vst.msk [vmem:[#allocation3 + $0x58] sm:$0xff] %vm995_vm13, %v1035_v44  ;;  %1054 = vst.msk [vmem:[#allocation3 + $0x70] sm:$0xff] %vm995_vm13, %v1049_v45  ;;  %v2370_v48 = vpack.c.bf16 %v1071_v47, %v1070_v46  ;;  %v1355_v44 = vld [vmem:[%s3436_s8 + $0x8] sm:$0xff]  ;;  %v1358_v45 = vld [vmem:[%s3436_s8 + $0x20] sm:$0xff] }
 0x49c   : > { %v1357_v46 = vld [vmem:[%s3436_s8 + $0x18] sm:$0xff]  ;;  %v1360_v47 = vld [vmem:[%s3436_s8 + $0x30] sm:$0xff] }
 0x49d   : > { %2371 = vmatpush1.bf16.msra.mxu0 %v2370_v48  ;;  %v1359_v48 = vld [vmem:[%s3436_s8 + $0x28] sm:$0xff] }
 0x49e   : > { %v1043_v49 = vpop.permute.xlu1 %1042  ;;  %v1057_v50 = vpop.permute.xlu0 %1056  ;;  %2372 = vmatprep.subr.bf16.mxu0 %v2869_v1  ;;  %v1073_v52 = vld [vmem:[#allocation3 + $0x48] sm:$0xff]  ;;  %v1076_v59 = vld [vmem:[#allocation3 + $0x60] sm:$0xff] }
 0x49f   : > { %1047 = vst.msk [vmem:[#allocation3 + $0x68] sm:$0xff] %vm995_vm13, %v1043_v49  ;;  %1062 = vst.msk [vmem:[#allocation3 + $0x80] sm:$0xff] %vm995_vm13, %v1057_v50  ;;  %v2373_v53 = vpack.c.bf16 %v1073_v52, %v1072_v51  ;;  %v1548_v49 = vld [vmem:[%s3438_s10] sm:$0xff]  ;;  %v1361_v50 = vld [vmem:[%s3436_s8 + $0x38] sm:$0xff] }
 0x4a0   : > { %v1550_v51 = vld [vmem:[%s3438_s10 + $0x10] sm:$0xff]  ;;  %v1549_v52 = vld [vmem:[%s3438_s10 + $0x8] sm:$0xff] }
 0x4a1   : > { %2374 = vmatpush1.bf16.msra.mxu0 %v2373_v53  ;;  %v1552_v53 = vld [vmem:[%s3438_s10 + $0x20] sm:$0xff] }
 0x4a2   : > { %v1051_v54 = vpop.permute.xlu1 %1050  ;;  %2375 = vmatprep.subr.bf16.mxu0 %v2869_v1  ;;  %v1075_v56 = vld [vmem:[#allocation3 + $0x58] sm:$0xff]  ;;  %v1078_v62 = vld [vmem:[#allocation3 + $0x70] sm:$0xff] }
 0x4a3   : > { %1055 = vst.msk [vmem:[#allocation3 + $0x78] sm:$0xff] %vm995_vm13, %v1051_v54  ;;  %v2376_v57 = vpack.c.bf16 %v1075_v56, %v1074_v55  ;;  %v1551_v54 = vld [vmem:[%s3438_s10 + $0x18] sm:$0xff]  ;;  %v1554_v55 = vld [vmem:[%s3438_s10 + $0x30] sm:$0xff]  ;;  %v1553_v56 = vld [vmem:[%s3438_s10 + $0x28] sm:$0xff] }
 0x4a5   : > { %2377 = vmatpush1.bf16.msra.mxu0 %v2376_v57  ;;  %v1555_v57 = vld [vmem:[%s3438_s10 + $0x38] sm:$0xff] }
 0x4a6   : > { %v1059_v58 = vpop.permute.xlu1 %1058  ;;  %2378 = vmatprep.subr.bf16.mxu0 %v2869_v1  ;;  %v1077_v60 = vld [vmem:[#allocation3 + $0x68] sm:$0xff]  ;;  %v1080_v2 = vld [vmem:[#allocation3 + $0x80] sm:$0xff] }
 0x4a7   : > { %1063 = vst.msk [vmem:[#allocation3 + $0x88] sm:$0xff] %vm995_vm13, %v1059_v58  ;;  %v2379_v61 = vpack.c.bf16 %v1077_v60, %v1076_v59 }
 0x4a9   : > { %2380 = vmatpush1.bf16.msra.mxu0 %v2379_v61 }
 0x4aa   : > { %2381 = vmatprep.subr.bf16.mxu0 %v2869_v1  ;;  %v1079_v63 = vld [vmem:[#allocation3 + $0x78] sm:$0xff] }
 0x4ab   : > { %v2382_v0 = vpack.c.bf16 %v1079_v63, %v1078_v62 }
 0x4ad   : > { %2383 = vmatpush1.bf16.msra.mxu0 %v2382_v0 }
 0x4ae   : > { %2384 = vmatprep.subr.bf16.mxu0 %v2869_v1  ;;  %v1081_v3 = vld [vmem:[#allocation3 + $0x88] sm:$0xff] }
 0x4af   : > { %v2385_v5 = vpack.c.bf16 %v1081_v3, %v1080_v2  ;;  %v1346_v3 = vld [vmem:[#allocation14] sm:$0xff] }
 0x4b0   : > { %2225 = vmatprep.mubr.msk.f32.mxu1 %vm1402_vm2, %v1346_v3 }
 0x4b1   : > { %2386 = vmatpush1.bf16.msra.mxu0 %v2385_v5 }
 0x4b2   : > { %2388 = vmatprep.subr.bf16.mxu0 %v2387_v24 }
 0x4b4   : > { %1160 = vmatmul.mubr.f32.vlgmr.msra.gmra.mrb[4].mxu0 %v977_v6 }
 0x4b5   : > { %2113 = vmatprep.mubr.msk.f32.mxu0 %vm1082_vm14, %v980_v7  ;;  %2390 = vmatpush3.bf16.msra.mxu0 %v2387_v24  ;;  %v1348_v24 = vld [vmem:[#allocation14 + $0x10] sm:$0xff] }
 0x4b6   : > { %2392 = vmatprep.subr.bf16.mxu0 %v2391_v26 }
 0x4b8   : > { %1165 = vmatmul.mubr.f32.gmra.mrb[6].mxu0 %v979_v8 }
 0x4b9   : > { %2114 = vmatprep.mubr.msk.f32.mxu0 %vm1082_vm14, %v982_v9  ;;  %2394 = vmatpush3.bf16.msra.mxu0 %v2391_v26  ;;  %v1350_v26 = vld [vmem:[#allocation14 + $0x20] sm:$0xff] }
 0x4ba   : > { %2397 = vmatprep.subr.msk.bf16.mxu0 %vm2396_vm0, %v2395_v29 }
 0x4bc   : > { %1170 = vmatmul.mubr.f32.gmra.mrb[8].mxu0 %v981_v10 }
 0x4bd   : > { %2115 = vmatprep.mubr.msk.f32.mxu0 %vm1082_vm14, %v984_v11  ;;  %2400 = vmatpush3.bf16.msk.msra.mxu0 %vm2396_vm0, %v2395_v29  ;;  %v1353_v29 = vld [vmem:[#allocation14 + $0x38] sm:$0xff] }
 0x4c0   : > { %1175 = vmatmul.mubr.f32.gmra.mrb[10].mxu0 %v983_v12 }
 0x587   : > { %v1161_v13 = vpop.f32.mrb[4].mxu0 }
 0x588   : > { %1184 = vrot.lane.b32.xlu0 %v1161_v13, %s2861_s25  ;;  %v1163_v14 = vpop.f32.mrb[5].mxu0 }
 0x58b   : > { %v1166_v15 = vpop.f32.mrb[6].mxu0 }
 0x58c   : > { %1186 = vrot.lane.b32.xlu1 %v1166_v15, %s2861_s25  ;;  %v1168_v16 = vpop.f32.mrb[7].mxu0 }
 0x58f   : > { %v1171_v17 = vpop.f32.mrb[8].mxu0 }
 0x590   : > { %1188 = vrot.lane.b32.xlu0 %v1171_v17, %s2861_s25  ;;  %v1173_v18 = vpop.f32.mrb[9].mxu0 }
 0x593   : > { %v1176_v19 = vpop.f32.mrb[10].mxu0 }
 0x594   : > { %1190 = vrot.lane.b32.xlu1 %v1176_v19, %s2861_s25  ;;  %v1178_v20 = vpop.f32.mrb[11].mxu0 }
 0x5fa   : > { %v1185_v30 = vpop.permute.xlu0 %1184 }
 0x5fb   : > { %v1196_v31 = vmax.f32 %v1161_v13, %v1185_v30  ;;  %v1540_v30 = vld [vmem:[%s3437_s9] sm:$0xff] }
 0x5fd   : > { %1204 = vrot.lane.b32.xlu0 %v1196_v31, %s2872_s21 }
 0x5fe   : > { %v1187_v32 = vpop.permute.xlu1 %1186 }
 0x5ff   : > { %v1197_v33 = vmax.f32 %v1166_v15, %v1187_v32 }
 0x601   : > { %1206 = vrot.lane.b32.xlu1 %v1197_v33, %s2872_s21 }
 0x602   : > { %v1189_v34 = vpop.permute.xlu0 %1188 }
 0x603   : > { %v1198_v35 = vmax.f32 %v1171_v17, %v1189_v34 }
 0x605   : > { %1208 = vrot.lane.b32.xlu0 %v1198_v35, %s2872_s21 }
 0x606   : > { %v1191_v36 = vpop.permute.xlu1 %1190 }
 0x607   : > { %v1199_v38 = vmax.f32 %v1176_v19, %v1191_v36 }
 0x609   : > { %1222 = vperm.xlu0 %2595, %v985_v37   ;;  %1210 = vrot.lane.b32.xlu1 %v1199_v38, %s2872_s21 }
 0x60d   : > { %1232 = vperm.xlu0 %2595, %v987_v39   ;;  %1227 = vperm.xlu1 %2594, %v986_v40  }
 0x611   : > { %1364 = vperm.xlu0 %2595, %v1354_v41   ;;  %1237 = vperm.xlu1 %2594, %v988_v42  }
 0x615   : > { %1374 = vperm.xlu0 %2595, %v1356_v43   ;;  %1369 = vperm.xlu1 %2594, %v1355_v44  }
 0x619   : > { %1384 = vperm.xlu0 %2595, %v1358_v45   ;;  %1379 = vperm.xlu1 %2594, %v1357_v46  }
 0x61d   : > { %1394 = vperm.xlu0 %2595, %v1360_v47   ;;  %1389 = vperm.xlu1 %2594, %v1359_v48  }
 0x621   : > { %1558 = vperm.xlu0 %2595, %v1548_v49   ;;  %1399 = vperm.xlu1 %2594, %v1361_v50  }
 0x625   : > { %1568 = vperm.xlu0 %2595, %v1550_v51   ;;  %1563 = vperm.xlu1 %2594, %v1549_v52  }
 0x629   : > { %1578 = vperm.xlu0 %2595, %v1552_v53   ;;  %1573 = vperm.xlu1 %2594, %v1551_v54  }
 0x62d   : > { %1588 = vperm.xlu0 %2595, %v1554_v55   ;;  %1583 = vperm.xlu1 %2594, %v1553_v56  }
 0x631   : > { %1593 = vperm.xlu1 %2594, %v1555_v57  }
 0x66f   : > { %v1205_v58 = vpop.permute.xlu0 %1204 }
 0x670   : > { %v1216_v59 = vmax.f32 %v1196_v31, %v1205_v58 }
 0x672   : > { %2211 = vmatprep.mubr.msk.f32.mxu0 %vm1240_vm1, %v1216_v59 }
 0x673   : > { %v1207_v60 = vpop.permute.xlu1 %1206 }
 0x674   : > { %v1217_v61 = vmax.f32 %v1197_v33, %v1207_v60 }
 0x676   : > { %2212 = vmatmul.mubr.msk.f32.vlgmr.msra.gmra.mrb[12].mxu0 %vm1240_vm1, %v1217_v61 }
 0x677   : > { %v1209_v62 = vpop.permute.xlu0 %1208 }
 0x678   : > { %v1218_v63 = vmax.f32 %v1198_v35, %v1209_v62 }
 0x67a   : > { %2214 = vmatprep.mubr.msk.f32.mxu0 %vm1240_vm1, %v1218_v63 }
 0x67b   : > { %v1211_v0 = vpop.permute.xlu1 %1210 }
 0x67c   : > { %v1219_v2 = vmax.f32 %v1199_v38, %v1211_v0 }
 0x67e   : > { %2215 = vmatmul.mubr.msk.f32.gmra.mrb[14].mxu0 %vm1240_vm1, %v1219_v2 }
 0x688   : > { %v1223_v7 = vpop.permute.xlu0 %1222 }
 0x68c   : > { %v1228_v5 = vpop.permute.xlu1 %1227  ;;  %v1233_v16 = vpop.permute.xlu0 %1232 }
 0x690   : > { %v1238_v14 = vpop.permute.xlu1 %1237  ;;  %v1365_v32 = vpop.permute.xlu0 %1364 }
 0x694   : > { %v1370_v31 = vpop.permute.xlu1 %1369  ;;  %v1375_v35 = vpop.permute.xlu0 %1374 }
 0x698   : > { %v1380_v33 = vpop.permute.xlu1 %1379  ;;  %v1385_v47 = vpop.permute.xlu0 %1384 }
 0x69c   : > { %v1390_v44 = vpop.permute.xlu1 %1389  ;;  %v1395_v59 = vpop.permute.xlu0 %1394 }
 0x6a0   : > { %v1400_v56 = vpop.permute.xlu1 %1399 }
 0x749   : > { %v2213_v6 = vpop.f32.mrb[12].mxu0 }
 0x74a   : > { %v1329_v8 = vadd.f32 %v2213_v6, %v1228_v5  ;;  %v1323_v9 = vpop.f32.mrb[13].mxu0  ;;  %v1541_v5 = vld [vmem:[%s3437_s9 + $0x8] sm:$0xff]  ;;  %v1542_v6 = vld [vmem:[%s3437_s9 + $0x10] sm:$0xff] }
 0x74b   : > { %v1324_v10 = vadd.f32 %v1323_v9, %v1223_v7  ;;  %v1543_v7 = vld [vmem:[%s3437_s9 + $0x18] sm:$0xff]  ;;  %v1545_v9 = vld [vmem:[%s3437_s9 + $0x28] sm:$0xff] }
 0x74c   : > { %v1343_v11 = vmax.f32 %v1329_v8, 0.0  ;;  %v1544_v8 = vld [vmem:[%s3437_s9 + $0x20] sm:$0xff] }
 0x74d   : > { %v1342_v12 = vmax.f32 %v1324_v10, 0.0  ;;  %v1546_v10 = vld [vmem:[%s3437_s9 + $0x30] sm:$0xff] }
 0x74f   : > { %v2401_v13 = vpack.c.bf16 %v1343_v11, %v1342_v12  ;;  %v1547_v11 = vld [vmem:[%s3437_s9 + $0x38] sm:$0xff]  ;;  %v1559_v12 = vpop.permute.xlu0 %1558 }
 0x751   : > { %v2216_v15 = vpop.f32.mrb[14].mxu0  ;;  %2402 = vmatprep.subr.bf16.mxu1 %v2401_v13 }
 0x752   : > { %v1339_v17 = vadd.f32 %v2216_v15, %v1238_v14  ;;  %v1333_v18 = vpop.f32.mrb[15].mxu0  ;;  %2404 = vmatpush3.bf16.msra.mxu1 %v2401_v13  ;;  %v1564_v13 = vpop.permute.xlu1 %1563 }
 0x753   : > { %v1334_v19 = vadd.f32 %v1333_v18, %v1233_v16  ;;  %v1569_v14 = vpop.permute.xlu0 %1568 }
 0x754   : > { %v1345_v20 = vmax.f32 %v1339_v17, 0.0 }
 0x755   : > { %v1344_v21 = vmax.f32 %v1334_v19, 0.0 }
 0x756   : > { %v1574_v16 = vpop.permute.xlu1 %1573 }
 0x757   : > { %v2405_v22 = vpack.c.bf16 %v1345_v20, %v1344_v21 }
 0x759   : > { %2406 = vmatprep.subr.bf16.mxu1 %v2405_v22 }
 0x75a   : > { %2408 = vmatpush3.bf16.msra.mxu1 %v2405_v22 }
 0x75d   : > { %2226 = vmatmul.mubr.msk.f32.vlgmr.msra.gmra.mrb[4].mxu1 %vm1402_vm2, %v1347_v23 }
 0x75e   : > { %2228 = vmatprep.mubr.msk.f32.mxu1 %vm1402_vm2, %v1348_v24 }
 0x761   : > { %2229 = vmatmul.mubr.msk.f32.gmra.mrb[6].mxu1 %vm1402_vm2, %v1349_v25 }
 0x762   : > { %2231 = vmatprep.mubr.msk.f32.mxu1 %vm1402_vm2, %v1350_v26  ;;  %v1579_v26 = vpop.permute.xlu0 %1578 }
 0x765   : > { %2232 = vmatmul.mubr.msk.f32.gmra.mrb[8].mxu1 %vm1402_vm2, %v1351_v27 }
 0x766   : > { %2234 = vmatprep.mubr.msk.f32.mxu1 %vm1402_vm2, %v1352_v28 }
 0x769   : > { %2235 = vmatmul.mubr.msk.f32.gmra.mrb[10].mxu1 %vm1402_vm2, %v1353_v29  ;;  %v1584_v29 = vpop.permute.xlu1 %1583 }
 0x76a   : > { %2253 = vmatprep.mubr.msk.f32.mxu1 %vm1596_vm3, %v1540_v30 }
 0x830   : > { %v2227_v34 = vpop.f32.mrb[4].mxu1 }
 0x831   : > { %v1499_v36 = vadd.f32 %v2227_v34, %v1370_v31  ;;  %v1493_v37 = vpop.f32.mrb[5].mxu1 }
 0x832   : > { %v1494_v38 = vadd.f32 %v1493_v37, %v1365_v32  ;;  %v1589_v37 = vpop.permute.xlu0 %1588 }
 0x833   : > { %v1533_v39 = vmax.f32 %v1499_v36, 0.0 }
 0x834   : > { %v1532_v40 = vmax.f32 %v1494_v38, 0.0  ;;  %v2230_v41 = vpop.f32.mrb[6].mxu1 }
 0x835   : > { %v1509_v42 = vadd.f32 %v2230_v41, %v1380_v33  ;;  %v1503_v43 = vpop.f32.mrb[7].mxu1 }
 0x836   : > { %v2409_v45 = vpack.c.bf16 %v1533_v39, %v1532_v40  ;;  %v1504_v46 = vadd.f32 %v1503_v43, %v1375_v35  ;;  %v1594_v40 = vpop.permute.xlu1 %1593 }
 0x837   : > { %v1535_v48 = vmax.f32 %v1509_v42, 0.0 }
 0x838   : > { %v1534_v49 = vmax.f32 %v1504_v46, 0.0  ;;  %v2233_v50 = vpop.f32.mrb[8].mxu1  ;;  %2410 = vmatprep.subr.bf16.mxu1 %v2409_v45 }
 0x839   : > { %v1519_v51 = vadd.f32 %v2233_v50, %v1390_v44  ;;  %v1513_v52 = vpop.f32.mrb[9].mxu1  ;;  %2412 = vmatpush3.bf16.msra.mxu1 %v2409_v45 }
 0x83a   : > { %v2413_v53 = vpack.c.bf16 %v1535_v48, %v1534_v49  ;;  %v1514_v54 = vadd.f32 %v1513_v52, %v1385_v47  ;;  %v1734_v52 = vld [vmem:[#allocation15] sm:$0xff] }
 0x83b   : > { %v1537_v55 = vmax.f32 %v1519_v51, 0.0  ;;  %2281 = vmatprep.mubr.msk.f32.mxu0 %vm1596_vm3, %v1734_v52 }
 0x83c   : > { %v1536_v57 = vmax.f32 %v1514_v54, 0.0  ;;  %v2236_v58 = vpop.f32.mrb[10].mxu1  ;;  %2414 = vmatprep.subr.bf16.mxu1 %v2413_v53 }
 0x83d   : > { %v1529_v60 = vadd.f32 %v2236_v58, %v1400_v56  ;;  %v1523_v61 = vpop.f32.mrb[11].mxu1  ;;  %2416 = vmatpush3.bf16.msra.mxu1 %v2413_v53 }
 0x83e   : > { %v2417_v62 = vpack.c.bf16 %v1537_v55, %v1536_v57  ;;  %v1524_v63 = vadd.f32 %v1523_v61, %v1395_v59 }
 0x83f   : > { %v1539_v0 = vmax.f32 %v1529_v60, 0.0 }
 0x840   : > { %v1538_v2 = vmax.f32 %v1524_v63, 0.0  ;;  %2418 = vmatprep.subr.bf16.mxu1 %v2417_v62 }
 0x841   : > { %2420 = vmatpush3.bf16.msra.mxu1 %v2417_v62 }
 0x842   : > { %v2421_v3 = vpack.c.bf16 %v1539_v0, %v1538_v2 }
 0x844   : > { %2422 = vmatprep.subr.bf16.mxu1 %v2421_v3 }
 0x845   : > { %2424 = vmatpush3.bf16.msra.mxu1 %v2421_v3 }
 0x848   : > { %2254 = vmatmul.mubr.msk.f32.vlgmr.msra.gmra.mrb[12].mxu1 %vm1596_vm3, %v1541_v5 }
 0x849   : > { %2256 = vmatprep.mubr.msk.f32.mxu1 %vm1596_vm3, %v1542_v6 }
 0x84c   : > { %2257 = vmatmul.mubr.msk.f32.gmra.mrb[14].mxu1 %vm1596_vm3, %v1543_v7 }
 0x84d   : > { %2259 = vmatprep.mubr.msk.f32.mxu1 %vm1596_vm3, %v1544_v8 }
 0x850   : > { %2260 = vmatmul.mubr.msk.f32.gmra.mrb[16].mxu1 %vm1596_vm3, %v1545_v9 }
 0x851   : > { %2262 = vmatprep.mubr.msk.f32.mxu1 %vm1596_vm3, %v1546_v10 }
 0x854   : > { %2263 = vmatmul.mubr.msk.f32.gmra.mrb[18].mxu1 %vm1596_vm3, %v1547_v11  ;;  %v1735_v11 = vld [vmem:[#allocation15 + $0x8] sm:$0xff] }
 0x91b   : > { %v2255_v15 = vpop.f32.mrb[12].mxu1 }
 0x91c   : > { %v1693_v17 = vadd.f32 %v2255_v15, %v1564_v13  ;;  %v1687_v18 = vpop.f32.mrb[13].mxu1  ;;  %v1737_v13 = vld [vmem:[#allocation15 + $0x18] sm:$0xff]  ;;  %v1738_v15 = vld [vmem:[%s3440_s12] sm:$0xff] }
 0x91d   : > { %v1688_v19 = vadd.f32 %v1687_v18, %v1559_v12  ;;  %v1736_v12 = vld [vmem:[#allocation15 + $0x10] sm:$0xff] }
 0x91e   : > { %v1727_v20 = vmax.f32 %v1693_v17, 0.0 }
 0x91f   : > { %v1726_v21 = vmax.f32 %v1688_v19, 0.0  ;;  %v2258_v22 = vpop.f32.mrb[14].mxu1 }
 0x920   : > { %v1703_v23 = vadd.f32 %v2258_v22, %v1574_v16  ;;  %v1697_v24 = vpop.f32.mrb[15].mxu1  ;;  %v1747_v25 = vsel %vm1743_vm4, %v1727_v20, 0.0  ;;  %v1741_v20 = vld [vmem:[%s3440_s12 + $0x18] sm:$0xff] }
 0x921   : > { %v1698_v27 = vadd.f32 %v1697_v24, %v1569_v14  ;;  %1748 = vadd.xlane.f32.xlu1 %v1747_v25  ;;  %v1744_v28 = vsel %vm1743_vm4, %v1726_v21, 0.0  ;;  %v1739_v14 = vld [vmem:[%s3440_s12 + $0x8] sm:$0xff] }
 0x922   : > { %v1729_v30 = vmax.f32 %v1703_v23, 0.0  ;;  %1745 = vadd.xlane.f32.xlu0 %v1744_v28 }
 0x923   : > { %v2261_v31 = vpop.f32.mrb[16].mxu1  ;;  %v1728_v32 = vmax.f32 %v1698_v27, 0.0 }
 0x924   : > { %v1707_v33 = vpop.f32.mrb[17].mxu1  ;;  %v1753_v34 = vsel %vm1743_vm4, %v1729_v30, 0.0  ;;  %v1713_v35 = vadd.f32 %v2261_v31, %v1584_v29  ;;  %v1742_v31 = vld [vmem:[%s3471_s23] sm:$0x3] }
 0x925   : > { %v1708_v36 = vadd.f32 %v1707_v33, %v1579_v26  ;;  %v1750_v42 = vsel %vm1743_vm4, %v1728_v32, 0.0 }
 0x926   : > { %1754 = vadd.xlane.f32.xlu0 %v1753_v34  ;;  %v1731_v43 = vmax.f32 %v1713_v35, 0.0 }
 0x927   : > { %v1730_v38 = vmax.f32 %v1708_v36, 0.0  ;;  %v2264_v39 = vpop.f32.mrb[18].mxu1 }
 0x928   : > { %v1717_v41 = vpop.f32.mrb[19].mxu1  ;;  %v1723_v44 = vadd.f32 %v2264_v39, %v1594_v40  ;;  %v1759_v50 = vsel %vm1743_vm4, %v1731_v43, 0.0 }
 0x929   : > { %v1718_v45 = vadd.f32 %v1717_v41, %v1589_v37  ;;  %v1756_v46 = vsel %vm1743_vm4, %v1730_v38, 0.0 }
 0x92a   : > { %1757 = vadd.xlane.f32.xlu1 %v1756_v46  ;;  %1751 = vadd.xlane.f32.xlu0 %v1750_v42  ;;  %v1733_v48 = vmax.f32 %v1723_v44, 0.0 }
 0x92b   : > { %v1732_v47 = vmax.f32 %v1718_v45, 0.0 }
 0x92c   : > { %v1765_v51 = vsel %vm1743_vm4, %v1733_v48, 0.0 }
 0x92d   : > { %v1762_v49 = vsel %vm1743_vm4, %v1732_v47, 0.0 }
 0x92e   : > { %1763 = vadd.xlane.f32.xlu1 %v1762_v49  ;;  %1760 = vadd.xlane.f32.xlu0 %v1759_v50 }
 0x932   : > { %1766 = vadd.xlane.f32.xlu0 %v1765_v51 }
 0x9ae   : > { %v1749_v53 = vpop.xlane.xlu1 %1748 }
 0x9af   : > { %v1769_v54 = vmul.f32 0.25, %v1749_v53  ;;  %v1746_v55 = vpop.xlane.xlu0 %1745 }
 0x9b0   : > { %v1768_v56 = vmul.f32 0.25, %v1746_v55 }
 0x9b2   : > { %v2425_v57 = vpack.c.bf16 %v1769_v54, %v1768_v56 }
 0x9b3   : > { %v1755_v58 = vpop.xlane.xlu0 %1754 }
 0x9b4   : > { %2426 = vmatprep.subr.bf16.mxu0 %v2425_v57  ;;  %v1771_v61 = vmul.f32 0.25, %v1755_v58 }
 0x9b5   : > { %2428 = vmatpush3.bf16.msra.mxu0 %v2425_v57 }
 0x9b7   : > { %v1758_v59 = vpop.xlane.xlu1 %1757  ;;  %v1752_v60 = vpop.xlane.xlu0 %1751 }
 0x9b8   : > { %v1770_v62 = vmul.f32 0.25, %v1752_v60  ;;  %v1772_v2 = vmul.f32 0.25, %v1758_v59 }
 0x9ba   : > { %v2429_v63 = vpack.c.bf16 %v1771_v61, %v1770_v62 }
 0x9bb   : > { %v1761_v0 = vpop.xlane.xlu0 %1760  ;;  %v1764_v5 = vpop.xlane.xlu1 %1763 }
 0x9bc   : > { %v1773_v3 = vmul.f32 0.25, %v1761_v0  ;;  %2430 = vmatprep.subr.bf16.mxu0 %v2429_v63  ;;  %v1774_v8 = vmul.f32 0.25, %v1764_v5 }
 0x9bd   : > { %2432 = vmatpush3.bf16.msra.mxu0 %v2429_v63 }
 0x9be   : > { %v2433_v6 = vpack.c.bf16 %v1773_v3, %v1772_v2 }
 0x9bf   : > { %v1767_v7 = vpop.xlane.xlu0 %1766 }
 0x9c0   : > { %v1775_v9 = vmul.f32 0.25, %v1767_v7  ;;  %2434 = vmatprep.subr.bf16.mxu0 %v2433_v6 }
 0x9c1   : > { %2436 = vmatpush3.bf16.msra.mxu0 %v2433_v6 }
 0x9c2   : > { %v2437_v10 = vpack.c.bf16 %v1775_v9, %v1774_v8 }
 0x9c4   : > { %2438 = vmatprep.subr.bf16.mxu0 %v2437_v10 }
 0x9c5   : > { %2440 = vmatpush3.bf16.msra.mxu0 %v2437_v10 }
 0x9c6   : > { %2441 = vmatprep.subr.bf16.mxu0 %v2869_v1 }
 0x9c8   : > { %2282 = vmatmul.mubr.msk.f32.vlgmr.msra.gmra.mrb[16].mxu0 %vm1596_vm3, %v1735_v11 }
 0x9c9   : > { %2284 = vmatprep.mubr.msk.f32.mxu0 %vm1596_vm3, %v1736_v12 }
 0x9cc   : > { %2285 = vmatmul.mubr.msk.f32.gmra.mrb[18].mxu0 %vm1596_vm3, %v1737_v13 }
 0x9cd   : > { %2295 = vmatprep.mubr.msk.f32.mxu0 %vm2877_vm5, %v2867_v4  ;;  %v1740_v4 = vld [vmem:[%s3440_s12 + $0x10] sm:$0xff] }
 0xa9b   : > { %v2283_v16 = vpop.f32.mrb[16].mxu0 }
 0xa9c   : > { %v1860_v17 = vadd.f32 %v2283_v16, %v1739_v14  ;;  %v1854_v18 = vpop.f32.mrb[17].mxu0 }
 0xa9d   : > { %v1855_v19 = vadd.f32 %v1854_v18, %v1738_v15 }
 0xa9e   : > { %v1874_v21 = vmax.f32 %v1860_v17, 0.0 }
 0xa9f   : > { %v1873_v22 = vmax.f32 %v1855_v19, 0.0  ;;  %v2286_v23 = vpop.f32.mrb[18].mxu0 }
 0xaa0   : > { %v1870_v24 = vadd.f32 %v2286_v23, %v1741_v20  ;;  %v1864_v25 = vpop.f32.mrb[19].mxu0 }
 0xaa1   : > { %v2442_v26 = vpack.c.bf16 %v1874_v21, %v1873_v22  ;;  %v1865_v27 = vadd.f32 %v1864_v25, %v1740_v4 }
 0xaa2   : > { %v1876_v28 = vmax.f32 %v1870_v24, 0.0 }
 0xaa3   : > { %v1875_v29 = vmax.f32 %v1865_v27, 0.0  ;;  %2443 = vmatpush3.bf16.msra.mxu0 %v2442_v26 }
 0xaa4   : > { %2444 = vmatprep.subr.bf16.mxu0 %v2869_v1 }
 0xaa5   : > { %v2445_v30 = vpack.c.bf16 %v1876_v28, %v1875_v29 }
 0xaa7   : > { %2446 = vmatpush3.bf16.msra.mxu0 %v2445_v30 }
 0xaaa   : > { %2296 = vmatmul.mubr.msk.f32.vlgmr.msra.gmra.mrb[20].mxu0 %vm1402_vm2, %v1742_v31 }
 0xb7d   : > { %v1946_v32 = vpop.f32.mrb[20].mxu0 }
 0xb7e   : > { %1951 = vst.msk [vmem:[%s582_s13] sm:$0x3] %vm1950_vm6, %v1946_v32  ;;  %v2297_v33 = vpop.f32.mrb[21].mxu0 }
 0xb7f PF: > { %s3473_s26 = sld [smem:[#allocation22_spill]] }
 0xb85   : > { %s29_s29 = sadd.s32 1, %s3473_s26  }
 0xb86   : > { %p26_p9 = scmp.ge.s32.totalorder %s29_s29, 4  }
 0xb88   :  { %28 = sbr.rel (!%p26_p9) target bundleno = 9 (0x9), region = 139 }
 0xb8f   :  { %1971 = vsyncpa [#allocation5], 1 }
 0xb90   :  { %1973 = vsyncpa [#allocation5 + $0x1], 1 }
 0xb91   :  { %1974 = vsyncpa [#allocation7], 1 }
 0xb92   :  { %1975 = vsyncpa [#allocation10], 1 }
 0xb93   :  { %1976 = vsyncpa [#allocation13], 1 }
 0xb94   :  { %1977 = vsyncpa [#allocation16], 1 }

</bundles_post_ra>
